<compile_context>
chip_gen: v7x
topology: tpu7x:2x2x1
jax: 0.10.0
libtpu: 0.0.40
codegen_flags: <defaults>
</compile_context>

<pallas_src>
import functools

import jax
import jax.numpy as jnp
from jax.experimental import pallas as pl
from jax.experimental.pallas import tpu as pltpu


def _round_up(x, m):
    return ((x + m - 1) // m) * m


def _vmem_capacity_bytes():
    try:
        return int(pltpu.get_tpu_info().vmem_capacity_bytes)
    except Exception:
        return 64 * 1024 * 1024   # conservative fallback (v7x per-TC VMEM)


# ----------------------------- Pallas kernel --------------------------------
def _fused_gcn_kernel(t0_ref, a_ref, wn_ref, b_ref, o_ref, ta_ref, tb_ref, *,
                      num_layers, block_rows, a_resident):
    """Grid = (layer l, row tile r).

    T_l (= H_l @ W_l) is fully materialized before layer l starts:
      l == 0        reads the precomputed T_0 input,   writes T_1 into tb
      l odd         reads tb,                           writes into ta
      l even (>=2)  reads ta,                           writes into tb
    The final layer writes its row stripe straight to the HBM output.
    """
    l = pl.program_id(0)
    r = pl.program_id(1)
    last = num_layers - 1

    row0 = pl.multiple_of(r * block_rows, block_rows)
    if a_resident:
        a_stripe = a_ref[pl.ds(row0, block_rows), :]     # A_hat resident in VMEM
    else:
        a_stripe = a_ref[...]                            # streamed row stripe
    bias = b_ref[0]                                      # (1, Fp) f32

    def layer_step(t_src, t_dst):
        # rows [row0, row0 + block_rows) of   A_hat @ T_l + b_l
        acc = jnp.dot(a_stripe, t_src[...], preferred_element_type=jnp.float32)
        acc = acc + bias

        @pl.when(l == last)                # final layer: no ReLU, write to HBM
        def _():
            o_ref[...] = acc.astype(o_ref.dtype)

        @pl.when(l < last)                 # hidden layer: ReLU + next layer's T
        def _():
            h = jnp.maximum(acc, 0.0).astype(t_dst.dtype)
            t_next = jnp.dot(h, wn_ref[0], preferred_element_type=jnp.float32)
            t_dst[pl.ds(row0, block_rows), :] = t_next.astype(t_dst.dtype)

    # mutually exclusive source/dest selection (no 3-way select, no dead loads)
    @pl.when(l == 0)
    def _():
        layer_step(t0_ref, tb_ref)

    @pl.when((l > 0) & (l % 2 == 1))
    def _():
        layer_step(tb_ref, ta_ref)

    @pl.when((l > 0) & (l % 2 == 0))
    def _():
        layer_step(ta_ref, tb_ref)


# ------------------------------ glue (plain JAX) -----------------------------
def build_normalized_adjacency(edge_index, num_nodes):
    """Dense A_hat = D^{-1/2} (A + I) D^{-1/2}, matching GCNConv's gcn_norm.

    Aggregates into dst from src (A[dst, src]); duplicate edges scatter-add;
    self-loops replaced with weight 1 (add_remaining_self_loops, unit weights).
    """
    src, dst = edge_index[0], edge_index[1]
    not_loop = (src != dst).astype(jnp.float32)
    adj = jnp.zeros((num_nodes, num_nodes), jnp.float32)
    adj = adj.at[dst, src].add(not_loop)
    adj = adj + jnp.eye(num_nodes, dtype=jnp.float32)
    deg = jnp.sum(adj, axis=1)
    d_inv_sqrt = jnp.where(deg > 0.0, jax.lax.rsqrt(deg), 0.0)
    return adj * d_inv_sqrt[:, None] * d_inv_sqrt[None, :]


def glorot(key, shape):
    fan_in, fan_out = shape
    limit = jnp.sqrt(6.0 / (fan_in + fan_out))
    return jax.random.uniform(key, shape, jnp.float32, -limit, limit)


def init_gcn_params(key, input_dim, hidden_dim, output_dim, num_layers):
    """Glorot weights, zero bias (GCNConv defaults)."""
    dims = [input_dim] + [hidden_dim] * (num_layers - 1) + [output_dim]
    params = []
    for i in range(num_layers):
        key, sub = jax.random.split(key)
        w = glorot(sub, (dims[i], dims[i + 1]))
        b = jnp.zeros((dims[i + 1],), jnp.float32)
        params.append((w, b))
    return params


def gcn_forward(x, edge_index, params, *, block_rows=None,
                compute_dtype=jnp.bfloat16, allow_resident_a=True):
    """Fused multi-layer GCN forward (inference) in one pallas_call."""
    n, f_in = x.shape
    num_layers = len(params)
    out_dim = params[-1][0].shape[1]

    # lane-pad feature dims and node count to multiples of 128 (lane-dense
    # stores, full MXU tiles); zero padding is exact through matmul/bias/ReLU.
    fp = _round_up(max([f_in] + [w.shape[1] for w, _ in params]), 128)
    n_pad = _round_up(n, 128)

    # row-tile size: 256 matches the v6e/v7x 256-wide MXU; clamp / snap so it
    # divides n_pad (always terminates: n_pad is a multiple of 128).
    if block_rows is None:
        block_rows = 256
    block_rows = max(8, _round_up(int(block_rows), 8))
    block_rows = min(block_rows, n_pad)
    while n_pad % block_rows != 0:
        block_rows -= 8

    cdt = jnp.dtype(compute_dtype)
    csz = cdt.itemsize

    # ---- VMEM budget: resident vs streamed A_hat, derived vmem_limit -------
    t0_bytes = n_pad * fp * csz                       # resident T_0 input
    scratch_bytes = 2 * n_pad * fp * csz              # T ping / pong
    w_bytes = 2 * fp * fp * csz                       # W_{l+1}, double-buffered
    misc_bytes = 2 * fp * 4 + 2 * block_rows * fp * 4 # bias + out tile buffers
    fixed_bytes = t0_bytes + scratch_bytes + w_bytes + misc_bytes
    a_res_bytes = n_pad * n_pad * csz
    a_stream_bytes = 2 * block_rows * n_pad * csz
    budget = int(0.80 * _vmem_capacity_bytes())
    a_resident = bool(allow_resident_a and (fixed_bytes + a_res_bytes) <= budget)
    total_bytes = fixed_bytes + (a_res_bytes if a_resident else a_stream_bytes)
    vmem_limit = int(min(budget, max(total_bytes + (4 << 20), 16 << 20)))

    # ---- host-side prep (plain XLA) -----------------------------------------
    a_hat = build_normalized_adjacency(edge_index, n)
    a_pad = jnp.zeros((n_pad, n_pad), jnp.float32).at[:n, :n].set(a_hat)
    a_pad = a_pad.astype(cdt)

    # T_0 = X @ W_0, computed once in XLA (removes the in-kernel serial bubble
    # and the resident X buffer).
    w0 = params[0][0]
    t0 = jnp.dot(x.astype(jnp.float32), w0, precision=jax.lax.Precision.HIGHEST)
    t0_pad = jnp.zeros((n_pad, fp), jnp.float32).at[:n, : w0.shape[1]].set(t0)
    t0_pad = t0_pad.astype(cdt)

    # "next" weights: wn_stack[l] = W_{l+1} (layer l builds T_{l+1}); the last
    # layer's index_map clamps to the previous block so no extra DMA is issued.
    n_wn = max(num_layers - 1, 1)
    wn_stack = jnp.zeros((n_wn, fp, fp), jnp.float32)
    for li in range(1, num_layers):
        w = params[li][0]
        wn_stack = wn_stack.at[li - 1, : w.shape[0], : w.shape[1]].set(w)
    wn_stack = wn_stack.astype(cdt)
    wn_last = n_wn - 1

    b_stack = jnp.zeros((num_layers, 1, fp), jnp.float32)
    for li, (_, b) in enumerate(params):
        b_stack = b_stack.at[li, 0, : b.shape[0]].set(b)

    grid = (num_layers, n_pad // block_rows)

    if a_resident:
        a_spec = pl.BlockSpec((n_pad, n_pad), lambda l, r: (0, 0))     # resident
    else:
        a_spec = pl.BlockSpec((block_rows, n_pad), lambda l, r: (r, 0))  # streamed

    # HBM output is written only by the final layer; hidden layers map to a
    # constant block so no intermediate writeback traffic is generated.
    if num_layers == 1:
        out_map = lambda l, r: (r, 0)
    else:
        out_map = lambda l, r: (jnp.where(l == num_layers - 1, r, 0), 0)

    kernel = functools.partial(_fused_gcn_kernel, num_layers=num_layers,
                               block_rows=block_rows, a_resident=a_resident)

    out_pad = pl.pallas_call(
        kernel,
        out_shape=jax.ShapeDtypeStruct((n_pad, fp), jnp.float32),
        grid=grid,
        in_specs=[
            pl.BlockSpec((n_pad, fp), lambda l, r: (0, 0)),                    # T_0
            a_spec,                                                            # A_hat
            pl.BlockSpec((1, fp, fp),
                         lambda l, r: (jnp.minimum(l, wn_last), 0, 0)),        # W_{l+1}
            pl.BlockSpec((1, 1, fp), lambda l, r: (l, 0, 0)),                  # b_l
        ],
        out_specs=pl.BlockSpec((block_rows, fp), out_map),
        scratch_shapes=[
            pltpu.VMEM((n_pad, fp), cdt),   # T ping
            pltpu.VMEM((n_pad, fp), cdt),   # T pong
        ],
        compiler_params=pltpu.CompilerParams(
            # Both axes carry VMEM-scratch dependencies (layer chain + every
            # row tile reads the full T_l), so they must stay sequential.
            dimension_semantics=("arbitrary", "arbitrary"),
            vmem_limit_bytes=vmem_limit,
        ),
    )(t0_pad, a_pad, wn_stack, b_stack)

    return out_pad[:n, :out_dim]


def gcn_forward_reference(x, edge_index, params):
    """Pure-JAX f32 reference for correctness checks."""
    a_hat = build_normalized_adjacency(edge_index, x.shape[0])
    hp = jax.lax.Precision.HIGHEST
    h = x
    for li, (w, b) in enumerate(params):
        h = jnp.dot(a_hat, jnp.dot(h, w, precision=hp), precision=hp) + b
        if li != len(params) - 1:
            h = jnp.maximum(h, 0.0)
    return h


# --------------------------------- main --------------------------------------
if __name__ == "__main__":
    key = jax.random.PRNGKey(0)

    num_nodes = 16
    input_dim = 8
    hidden_dim = 32
    output_dim = 4
    num_layers = 3          # exercises first_gc, one mid layer, and final_gc
    num_edges = 40

    key, kx, ksrc, kdst, kp = jax.random.split(key, 5)
    x = jax.random.normal(kx, (num_nodes, input_dim), jnp.float32)
    src = jax.random.randint(ksrc, (num_edges,), 0, num_nodes)
    dst = jax.random.randint(kdst, (num_edges,), 0, num_nodes)
    edge_index = jnp.stack([src, dst], axis=0)   # [2, E]

    params = init_gcn_params(kp, input_dim, hidden_dim, output_dim, num_layers)

    ref = jax.block_until_ready(gcn_forward_reference(x, edge_index, params))

    # 1) default perf path: bf16 compute, VMEM-resident A_hat, single row tile.
    out_bf16 = jax.block_until_ready(gcn_forward(x, edge_index, params))
    assert out_bf16.shape == (num_nodes, output_dim)
    assert jnp.allclose(out_bf16, ref, rtol=5e-2, atol=5e-2), float(
        jnp.max(jnp.abs(out_bf16 - ref)))

    # 2) streamed-A path, multiple row tiles (exercises the (layer, row-tile)
    #    grid and the T ping/pong), f32 compute.
    out_f32 = jax.block_until_ready(
        gcn_forward(x, edge_index, params, block_rows=64,
                    compute_dtype=jnp.float32, allow_resident_a=False))
    assert out_f32.shape == (num_nodes, output_dim)
    assert jnp.allclose(out_f32, ref, rtol=5e-2, atol=5e-2), float(
        jnp.max(jnp.abs(out_f32 - ref)))

    print("KERNEL_OK")
</pallas_src>

<mosaic_0001>
module attributes {stable_mosaic.version = 11 : i64} {
  func.func @_fused_gcn_kernel(%arg0: i32, %arg1: i32, %arg2: memref<128x128xbf16, #tpu.memory_space<vmem>>, %arg3: memref<128x128xbf16, #tpu.memory_space<vmem>>, %arg4: memref<1x128x128xbf16, #tpu.memory_space<vmem>>, %arg5: memref<1x1x128xf32, #tpu.memory_space<vmem>>, %arg6: memref<128x128xf32, #tpu.memory_space<vmem>>, %arg7: memref<128x128xbf16, #tpu.memory_space<vmem>>, %arg8: memref<128x128xbf16, #tpu.memory_space<vmem>>) attributes {dimension_semantics = [#tpu.dimension_semantics<arbitrary>, #tpu.dimension_semantics<arbitrary>], iteration_bounds = array<i64: 3, 1>, scalar_prefetch = 0 : i64, scratch_operands = 2 : i64, tpu.core_type = #tpu.core_type<tc>, window_params = [{pipeline_mode = #tpu.pipeline_mode<synchronous>, transform_indices = @transform_0, window_bounds = array<i64: 128, 128>}, {pipeline_mode = #tpu.pipeline_mode<synchronous>, transform_indices = @transform_1, window_bounds = array<i64: 128, 128>}, {transform_indices = @transform_2, window_bounds = array<i64: 1, 128, 128>}, {transform_indices = @transform_3, window_bounds = array<i64: 1, 1, 128>}, {transform_indices = @transform_4, window_bounds = array<i64: 128, 128>}]} {
    %c128_i32 = arith.constant 128 : i32
    %0 = arith.muli %arg1, %c128_i32 : i32
    %1 = tpu.assume_multiple %0, 128 : i32
    %2 = arith.index_cast %1 : i32 to index
    %c0 = arith.constant 0 : index
    %3 = vector.load %arg3[%2, %c0] : memref<128x128xbf16, #tpu.memory_space<vmem>>, vector<128x128xbf16>
    %c0_0 = arith.constant 0 : index
    %c0_1 = arith.constant 0 : index
    %c0_2 = arith.constant 0 : index
    %4 = vector.load %arg5[%c0_0, %c0_1, %c0_2] : memref<1x1x128xf32, #tpu.memory_space<vmem>>, vector<1x1x128xf32>
    %5 = vector.shape_cast %4 : vector<1x1x128xf32> to vector<1x128xf32>
    %c0_i32 = arith.constant 0 : i32
    %6 = arith.cmpi eq, %arg0, %c0_i32 : i32
    %7 = arith.extui %6 : i1 to i32
    %c0_i32_3 = arith.constant 0 : i32
    %8 = arith.cmpi ne, %7, %c0_i32_3 : i32
    scf.if %8 {
      %c0_20 = arith.constant 0 : index
      %c0_21 = arith.constant 0 : index
      %39 = vector.load %arg2[%c0_20, %c0_21] : memref<128x128xbf16, #tpu.memory_space<vmem>>, vector<128x128xbf16>
      %cst = arith.constant dense<0.000000e+00> : vector<128x128xf32>
      %40 = tpu.matmul %3, %39, %cst {dimension_numbers = #tpu.dot_dimension_numbers<[1], [0], [0], [1], [0, 0, 1, 1], [], []>} : vector<128x128xbf16>, vector<128x128xbf16>, vector<128x128xf32> -> vector<128x128xf32>
      %41 = vector.broadcast %5 : vector<1x128xf32> to vector<128x128xf32>
      %42 = arith.addf %40, %41 : vector<128x128xf32>
      %c2_i32_22 = arith.constant 2 : i32
      %43 = arith.cmpi eq, %arg0, %c2_i32_22 : i32
      %44 = arith.extui %43 : i1 to i32
      %c0_i32_23 = arith.constant 0 : i32
      %45 = arith.cmpi ne, %44, %c0_i32_23 : i32
      scf.if %45 {
        %c0_26 = arith.constant 0 : index
        %c0_27 = arith.constant 0 : index
        %49 = vector.load %arg6[%c0_26, %c0_27] : memref<128x128xf32, #tpu.memory_space<vmem>>, vector<128x128xf32>
        tpu.vector_store %arg6[%c0_26, %c0_27], %42 {strides = array<i32>} : memref<128x128xf32, #tpu.memory_space<vmem>>, vector<128x128xf32>,
      } else {
      }
      %c2_i32_24 = arith.constant 2 : i32
      %46 = arith.cmpi slt, %arg0, %c2_i32_24 : i32
      %47 = arith.extui %46 : i1 to i32
      %c0_i32_25 = arith.constant 0 : i32
      %48 = arith.cmpi ne, %47, %c0_i32_25 : i32
      scf.if %48 {
        %cst_26 = arith.constant 0.000000e+00 : f32
        %49 = vector.broadcast %cst_26 : f32 to vector<128x128xf32>
        %50 = arith.maximumf %42, %49 : vector<128x128xf32>
        %51 = arith.truncf %50 : vector<128x128xf32> to vector<128x128xbf16>
        %c0_27 = arith.constant 0 : index
        %c0_28 = arith.constant 0 : index
        %c0_29 = arith.constant 0 : index
        %52 = vector.load %arg4[%c0_27, %c0_28, %c0_29] : memref<1x128x128xbf16, #tpu.memory_space<vmem>>, vector<1x128x128xbf16>
        %53 = vector.shape_cast %52 : vector<1x128x128xbf16> to vector<128x128xbf16>
        %cst_30 = arith.constant dense<0.000000e+00> : vector<128x128xf32>
        %54 = tpu.matmul %51, %53, %cst_30 {dimension_numbers = #tpu.dot_dimension_numbers<[1], [0], [0], [1], [0, 0, 1, 1], [], []>} : vector<128x128xbf16>, vector<128x128xbf16>, vector<128x128xf32> -> vector<128x128xf32>
        %55 = arith.truncf %54 : vector<128x128xf32> to vector<128x128xbf16>
        %56 = arith.index_cast %1 : i32 to index
        %c0_31 = arith.constant 0 : index
        %57 = vector.load %arg8[%56, %c0_31] : memref<128x128xbf16, #tpu.memory_space<vmem>>, vector<128x128xbf16>
        tpu.vector_store %arg8[%56, %c0_31], %55 {strides = array<i32>} : memref<128x128xbf16, #tpu.memory_space<vmem>>, vector<128x128xbf16>,
      } else {
      }
    } else {
    }
    %c0_i32_4 = arith.constant 0 : i32
    %9 = arith.cmpi sgt, %arg0, %c0_i32_4 : i32
    %c2_i32 = arith.constant 2 : i32
    %c0_i32_5 = arith.constant 0 : i32
    %10 = arith.cmpi eq, %c2_i32, %c0_i32_5 : i32
    %c1_i32 = arith.constant 1 : i32
    %11 = arith.select %10, %c1_i32, %c2_i32 : i32
    %12 = arith.remsi %arg0, %11 : i32
    %c0_i32_6 = arith.constant 0 : i32
    %13 = arith.cmpi ne, %12, %c0_i32_6 : i32
    %c0_i32_7 = arith.constant 0 : i32
    %14 = arith.cmpi slt, %12, %c0_i32_7 : i32
    %c0_i32_8 = arith.constant 0 : i32
    %15 = arith.cmpi slt, %11, %c0_i32_8 : i32
    %16 = arith.xori %14, %15 : i1
    %17 = arith.andi %16, %13 : i1
    %18 = arith.addi %12, %11 : i32
    %19 = arith.select %17, %18, %12 : i32
    %c1_i32_9 = arith.constant 1 : i32
    %20 = arith.cmpi eq, %19, %c1_i32_9 : i32
    %21 = arith.andi %9, %20 : i1
    %22 = arith.extui %21 : i1 to i32
    %c0_i32_10 = arith.constant 0 : i32
    %23 = arith.cmpi ne, %22, %c0_i32_10 : i32
    scf.if %23 {
      %c0_20 = arith.constant 0 : index
      %c0_21 = arith.constant 0 : index
      %39 = vector.load %arg8[%c0_20, %c0_21] : memref<128x128xbf16, #tpu.memory_space<vmem>>, vector<128x128xbf16>
      %cst = arith.constant dense<0.000000e+00> : vector<128x128xf32>
      %40 = tpu.matmul %3, %39, %cst {dimension_numbers = #tpu.dot_dimension_numbers<[1], [0], [0], [1], [0, 0, 1, 1], [], []>} : vector<128x128xbf16>, vector<128x128xbf16>, vector<128x128xf32> -> vector<128x128xf32>
      %41 = vector.broadcast %5 : vector<1x128xf32> to vector<128x128xf32>
      %42 = arith.addf %40, %41 : vector<128x128xf32>
      %c2_i32_22 = arith.constant 2 : i32
      %43 = arith.cmpi eq, %arg0, %c2_i32_22 : i32
      %44 = arith.extui %43 : i1 to i32
      %c0_i32_23 = arith.constant 0 : i32
      %45 = arith.cmpi ne, %44, %c0_i32_23 : i32
      scf.if %45 {
        %c0_26 = arith.constant 0 : index
        %c0_27 = arith.constant 0 : index
        %49 = vector.load %arg6[%c0_26, %c0_27] : memref<128x128xf32, #tpu.memory_space<vmem>>, vector<128x128xf32>
        tpu.vector_store %arg6[%c0_26, %c0_27], %42 {strides = array<i32>} : memref<128x128xf32, #tpu.memory_space<vmem>>, vector<128x128xf32>,
      } else {
      }
      %c2_i32_24 = arith.constant 2 : i32
      %46 = arith.cmpi slt, %arg0, %c2_i32_24 : i32
      %47 = arith.extui %46 : i1 to i32
      %c0_i32_25 = arith.constant 0 : i32
      %48 = arith.cmpi ne, %47, %c0_i32_25 : i32
      scf.if %48 {
        %cst_26 = arith.constant 0.000000e+00 : f32
        %49 = vector.broadcast %cst_26 : f32 to vector<128x128xf32>
        %50 = arith.maximumf %42, %49 : vector<128x128xf32>
        %51 = arith.truncf %50 : vector<128x128xf32> to vector<128x128xbf16>
        %c0_27 = arith.constant 0 : index
        %c0_28 = arith.constant 0 : index
        %c0_29 = arith.constant 0 : index
        %52 = vector.load %arg4[%c0_27, %c0_28, %c0_29] : memref<1x128x128xbf16, #tpu.memory_space<vmem>>, vector<1x128x128xbf16>
        %53 = vector.shape_cast %52 : vector<1x128x128xbf16> to vector<128x128xbf16>
        %cst_30 = arith.constant dense<0.000000e+00> : vector<128x128xf32>
        %54 = tpu.matmul %51, %53, %cst_30 {dimension_numbers = #tpu.dot_dimension_numbers<[1], [0], [0], [1], [0, 0, 1, 1], [], []>} : vector<128x128xbf16>, vector<128x128xbf16>, vector<128x128xf32> -> vector<128x128xf32>
        %55 = arith.truncf %54 : vector<128x128xf32> to vector<128x128xbf16>
        %56 = arith.index_cast %1 : i32 to index
        %c0_31 = arith.constant 0 : index
        %57 = vector.load %arg7[%56, %c0_31] : memref<128x128xbf16, #tpu.memory_space<vmem>>, vector<128x128xbf16>
        tpu.vector_store %arg7[%56, %c0_31], %55 {strides = array<i32>} : memref<128x128xbf16, #tpu.memory_space<vmem>>, vector<128x128xbf16>,
      } else {
      }
    } else {
    }
    %c0_i32_11 = arith.constant 0 : i32
    %24 = arith.cmpi sgt, %arg0, %c0_i32_11 : i32
    %c2_i32_12 = arith.constant 2 : i32
    %c0_i32_13 = arith.constant 0 : i32
    %25 = arith.cmpi eq, %c2_i32_12, %c0_i32_13 : i32
    %c1_i32_14 = arith.constant 1 : i32
    %26 = arith.select %25, %c1_i32_14, %c2_i32_12 : i32
    %27 = arith.remsi %arg0, %26 : i32
    %c0_i32_15 = arith.constant 0 : i32
    %28 = arith.cmpi ne, %27, %c0_i32_15 : i32
    %c0_i32_16 = arith.constant 0 : i32
    %29 = arith.cmpi slt, %27, %c0_i32_16 : i32
    %c0_i32_17 = arith.constant 0 : i32
    %30 = arith.cmpi slt, %26, %c0_i32_17 : i32
    %31 = arith.xori %29, %30 : i1
    %32 = arith.andi %31, %28 : i1
    %33 = arith.addi %27, %26 : i32
    %34 = arith.select %32, %33, %27 : i32
    %c0_i32_18 = arith.constant 0 : i32
    %35 = arith.cmpi eq, %34, %c0_i32_18 : i32
    %36 = arith.andi %24, %35 : i1
    %37 = arith.extui %36 : i1 to i32
    %c0_i32_19 = arith.constant 0 : i32
    %38 = arith.cmpi ne, %37, %c0_i32_19 : i32
    scf.if %38 {
      %c0_20 = arith.constant 0 : index
      %c0_21 = arith.constant 0 : index
      %39 = vector.load %arg7[%c0_20, %c0_21] : memref<128x128xbf16, #tpu.memory_space<vmem>>, vector<128x128xbf16>
      %cst = arith.constant dense<0.000000e+00> : vector<128x128xf32>
      %40 = tpu.matmul %3, %39, %cst {dimension_numbers = #tpu.dot_dimension_numbers<[1], [0], [0], [1], [0, 0, 1, 1], [], []>} : vector<128x128xbf16>, vector<128x128xbf16>, vector<128x128xf32> -> vector<128x128xf32>
      %41 = vector.broadcast %5 : vector<1x128xf32> to vector<128x128xf32>
      %42 = arith.addf %40, %41 : vector<128x128xf32>
      %c2_i32_22 = arith.constant 2 : i32
      %43 = arith.cmpi eq, %arg0, %c2_i32_22 : i32
      %44 = arith.extui %43 : i1 to i32
      %c0_i32_23 = arith.constant 0 : i32
      %45 = arith.cmpi ne, %44, %c0_i32_23 : i32
      scf.if %45 {
        %c0_26 = arith.constant 0 : index
        %c0_27 = arith.constant 0 : index
        %49 = vector.load %arg6[%c0_26, %c0_27] : memref<128x128xf32, #tpu.memory_space<vmem>>, vector<128x128xf32>
        tpu.vector_store %arg6[%c0_26, %c0_27], %42 {strides = array<i32>} : memref<128x128xf32, #tpu.memory_space<vmem>>, vector<128x128xf32>,
      } else {
      }
      %c2_i32_24 = arith.constant 2 : i32
      %46 = arith.cmpi slt, %arg0, %c2_i32_24 : i32
      %47 = arith.extui %46 : i1 to i32
      %c0_i32_25 = arith.constant 0 : i32
      %48 = arith.cmpi ne, %47, %c0_i32_25 : i32
      scf.if %48 {
        %cst_26 = arith.constant 0.000000e+00 : f32
        %49 = vector.broadcast %cst_26 : f32 to vector<128x128xf32>
        %50 = arith.maximumf %42, %49 : vector<128x128xf32>
        %51 = arith.truncf %50 : vector<128x128xf32> to vector<128x128xbf16>
        %c0_27 = arith.constant 0 : index
        %c0_28 = arith.constant 0 : index
        %c0_29 = arith.constant 0 : index
        %52 = vector.load %arg4[%c0_27, %c0_28, %c0_29] : memref<1x128x128xbf16, #tpu.memory_space<vmem>>, vector<1x128x128xbf16>
        %53 = vector.shape_cast %52 : vector<1x128x128xbf16> to vector<128x128xbf16>
        %cst_30 = arith.constant dense<0.000000e+00> : vector<128x128xf32>
        %54 = tpu.matmul %51, %53, %cst_30 {dimension_numbers = #tpu.dot_dimension_numbers<[1], [0], [0], [1], [0, 0, 1, 1], [], []>} : vector<128x128xbf16>, vector<128x128xbf16>, vector<128x128xf32> -> vector<128x128xf32>
        %55 = arith.truncf %54 : vector<128x128xf32> to vector<128x128xbf16>
        %56 = arith.index_cast %1 : i32 to index
        %c0_31 = arith.constant 0 : index
        %57 = vector.load %arg8[%56, %c0_31] : memref<128x128xbf16, #tpu.memory_space<vmem>>, vector<128x128xbf16>
        tpu.vector_store %arg8[%56, %c0_31], %55 {strides = array<i32>} : memref<128x128xbf16, #tpu.memory_space<vmem>>, vector<128x128xbf16>,
      } else {
      }
    } else {
    }
    return
  }
  func.func @transform_0(%arg0: i32, %arg1: i32) -> (i32, i32) {
    %c0_i32 = arith.constant 0 : i32
    %c0_i32_0 = arith.constant 0 : i32
    %c0_i32_1 = arith.constant 0 : i32
    return %c0_i32, %c0_i32_0 : i32, i32
  }
  func.func @transform_1(%arg0: i32, %arg1: i32) -> (i32, i32) {
    %c0_i32 = arith.constant 0 : i32
    %c0_i32_0 = arith.constant 0 : i32
    %c0_i32_1 = arith.constant 0 : i32
    return %c0_i32, %c0_i32_0 : i32, i32
  }
  func.func @transform_2(%arg0: i32, %arg1: i32) -> (i32, i32, i32) {
    %c1_i32 = arith.constant 1 : i32
    %0 = arith.minsi %arg0, %c1_i32 : i32
    %c0_i32 = arith.constant 0 : i32
    %c0_i32_0 = arith.constant 0 : i32
    %c0_i32_1 = arith.constant 0 : i32
    return %0, %c0_i32, %c0_i32_0 : i32, i32, i32
  }
  func.func @transform_3(%arg0: i32, %arg1: i32) -> (i32, i32, i32) {
    %c0_i32 = arith.constant 0 : i32
    %c0_i32_0 = arith.constant 0 : i32
    %c0_i32_1 = arith.constant 0 : i32
    return %arg0, %c0_i32, %c0_i32_0 : i32, i32, i32
  }
  func.func @transform_4(%arg0: i32, %arg1: i32) -> (i32, i32) {
    %c2_i32 = arith.constant 2 : i32
    %0 = arith.cmpi eq, %arg0, %c2_i32 : i32
    %c0_i32 = arith.constant 0 : i32
    %1 = arith.select %0, %arg1, %c0_i32 : i32
    %c0_i32_0 = arith.constant 0 : i32
    %c0_i32_1 = arith.constant 0 : i32
    return %1, %c0_i32_0 : i32, i32
  }
}

</mosaic_0001>

<bundles_post_ra>
// kernel: tpu_custom_call.1
= control target key start
LH: loop header
LB: loop body
LE: loop exit
PB: predicated region body
PF: predicated region fallthrough
CT: control target
= control target key end

     0   :  { %9 = vsyncpa [#allocation5], 0  ;;  %s3006_s0 = inlined_call_operand.hbm [shape: bf16[128,128], index: 0, kind: input, shape index: {}]   ;;  %s3007_s1 = inlined_call_operand.hbm [shape: bf16[128,128], index: 1, kind: input, shape index: {}]   ;;  %s3008_s2 = inlined_call_operand.hbm [shape: bf16[2,128,128], index: 2, kind: input, shape index: {}]   ;;  %s3009_s3 = inlined_call_operand.vmem [shape: f32[3,1,128], index: 3, kind: input, shape index: {}]   ;;  %s3010_s4 = inlined_call_operand.hbm [shape: f32[128,128], index: 4, kind: output, shape index: {}]  }
   0x1   :  { %10 = vsyncpa [#allocation8], 0 }
   0x2   :  { %11 = vsyncpa [#allocation6], 0 }
   0x3   :  { %13 = vsyncpa [#allocation6 + $0x1], 0  ;;  %s2488_s15 = smov 0   ;;  %s2490_s16 = smov 0  }
   0x4   :  { %s2492_s17 = smov 0   ;;  %s2494_s18 = smov 0  }
   0x5   :  { %s2496_s19 = smov 0   ;;  %s2498_s20 = smov 0  }
   0x6 LB: > { %s2517_s21 = sadd.s32 4294967295, %s2453_s20   ;;  %p91_p0 = scmp.ne.s32.totalorder %s2441_s17, %s2437_s16  ;;  %s2453_s20 = sphi %s2498_s20, %s19_s20   ;;  %s2449_s19 = sphi %s2496_s19, %s3031_s19   ;;  %s2445_s18 = sphi %s2494_s18, %s3030_s18   ;;  %s2441_s17 = sphi %s2492_s17, %s3029_s17   ;;  %s2437_s16 = sphi %s2490_s16, %s3028_s16   ;;  %s2433_s15 = sphi %s2488_s15, %s3027_s15  }
   0x7   : > { %p92_p1 = scmp.eq.s32.totalorder %s2453_s20, 0  ;;  %p97_p2 = scmp.ne.s32.totalorder %s2437_s16, %s2433_s15 }
   0x8   : > { %p3011_p3 = scmp.eq.s32.totalorder %s2517_s21, 0  ;;  %p1689_p5 = scmp.ge.s32.totalorder %s2453_s20, 1 }
   0x9   : > { %p93_p4 = por %p92_p1, %p91_p0  ;;  %p164_p7 = scmp.lt.s32.totalorder %s2453_s20, 4 }
   0xa   : > { %p2528_p6 = por %p3011_p3, %p97_p2  ;;  %s2455_s25 = smov [#allocation4]  }
   0xb   : > { %p2533_p8 = pnand %p1689_p5, %p164_p7  ;;  %s176_s26 = sshll.u32 %s2455_s25, 4  ;;  %s2537_s26 = int_to_ptr.vmem [resolvable:$true] %s176_s26 }
   0xc   : > { %s3014_s23 = scalar_select %p2528_p6, 1, 0 }
   0xd   : > { %s3015_s24 = scalar_select %p2533_p8, 1, 0 }
   0xe   : > { %p2169_p9 = pneg %p2533_p8  ;;  %p2186_p10 = scmp.lt.s32.totalorder %s2453_s20, 3 }
   0xf   : > { %s2456_s29 = smov [#allocation7]   ;;  %s2279_s7 = scalar_lea.hbm %s3006_s0, 1024 }
  0x10   : > { %p2544_p11 = pnand %p2169_p9, %p3011_p3  ;;  %p2548_p12 = pnand %p2186_p10, %p93_p4 }
  0x11   : > { %s189_s30 = sshll.u32 %s2456_s29, 4  ;;  %p2280_p13 = scmp.ne.s32.totalorder %s3006_s0, %s2279_s7  ;;  %s2552_s30 = int_to_ptr.vmem [resolvable:$true] %s189_s30 }
  0x12   : > { %p2281_p0 = pneg %p2544_p11  ;;  %p2286_p4 = scmp.lt.u32.totalorder %s2279_s7, %s3006_s0 }
  0x14   : > { %p2282_p1 = pnand %p2281_p0, %p2280_p13 }
  0x16   : > { %p2283_p2 = pneg %p2282_p1 }
  0x18   : > { %p2288_p5 = pnand %p2286_p4, %p2283_p2 }
  0x1a   : > { %2291 = shalt.err (!%p2288_p5)
}
  0x1b   : > { %s2292_s12 = scalar_lea.vmem %s2537_s26, 1024  ;;  %p2300_p3 = scmp.lt.s32.totalorder %s2537_s26, %s2537_s26 }
  0x1c   : > { %p2293_p7 = scmp.ne.s32.totalorder %s2537_s26, %s2292_s12  ;;  %p2301_p13 = scmp.lt.s32.totalorder %s2292_s12, %s2292_s12 }
  0x1e   : > { %p2295_p9 = pnand %p2293_p7, %p2281_p0  ;;  %p2302_p1 = por %p2301_p13, %p2300_p3 }
  0x20   : > { %p2296_p10 = pneg %p2295_p9 }
  0x22   : > { %p2303_p6 = pnand %p2302_p1, %p2296_p10 }
  0x24   : > { %2306 = shalt.err (!%p2303_p6)
}
  0x25   : > { %s2457_s13 = smov 64   ;;  %s2458_s14 = smov 4  }
  0x26   : > { %2172 = dma.hbm_to_vmem [thread:$0]  (!%p2544_p11), %s3006_s0, 1024, %s2537_s26, [#allocation5], %s2457_s13, %s2457_s13, %s2458_s14  }
  0x27   : > { %s2307_s6 = scalar_lea.hbm %s3007_s1, 1024 }
  0x28   : > { %p2308_p3 = scmp.ne.s32.totalorder %s3007_s1, %s2307_s6  ;;  %p2314_p4 = scmp.lt.u32.totalorder %s2307_s6, %s3007_s1 }
  0x2a   : > { %p2310_p6 = pnand %p2308_p3, %p2281_p0 }
  0x2c   : > { %p2311_p2 = pneg %p2310_p6 }
  0x2e   : > { %p2316_p5 = pnand %p2314_p4, %p2311_p2 }
  0x30   : > { %2319 = shalt.err (!%p2316_p5)
}
  0x31   : > { %s2320_s26 = scalar_lea.vmem %s2552_s30, 1024  ;;  %p2328_p13 = scmp.lt.s32.totalorder %s2552_s30, %s2552_s30 }
  0x32   : > { %p2321_p7 = scmp.ne.s32.totalorder %s2552_s30, %s2320_s26  ;;  %p2329_p1 = scmp.lt.s32.totalorder %s2320_s26, %s2320_s26 }
  0x34   : > { %p2323_p9 = pnand %p2321_p7, %p2281_p0  ;;  %p2330_p3 = por %p2329_p1, %p2328_p13 }
  0x36   : > { %p2324_p10 = pneg %p2323_p9 }
  0x38   : > { %p2331_p6 = pnand %p2330_p3, %p2324_p10 }
  0x3a   : > { %2334 = shalt.err (!%p2331_p6)
}
  0x3b   : > { %2175 = dma.hbm_to_vmem [thread:$0]  (!%p2544_p11), %s3007_s1, 1024, %s2552_s30, [#allocation8], %s2457_s13, %s2457_s13, %s2458_s14  }
  0x3c   : > { %s31_s25 = sadd.s32 1, %s2449_s19  ;;  %p77_p0 = scmp.lt.s32.totalorder %s2449_s19, 1 }
  0x3d   : > { %p33_p2 = scmp.ge.s32.totalorder %s31_s25, 3  ;;  %s203_s29 = sand.u32 1, %s2453_s20  }
  0x3e   : > { %s78_s27 = scalar_select %p77_p0, %s2449_s19, 1 }
  0x3f   : > { %s3033_s25 = smov (%p33_p2, %s31_s25), 0  ;;  %s205_s5 = sand.u32 1, %s2441_s17  }
  0x40   : > { %p79_p4 = scmp.lt.s32.totalorder %s3033_s25, 1  ;;  %s1693_s6 = sshll.u32 %s205_s5, 6 }
  0x41   : > { %s1770_s7 = sshll.u32 %s78_s27, 10  ;;  %s207_s26 = scalar_lea.vmem [#allocation9], %s1693_s6 }
  0x42   : > { %s80_s8 = scalar_select %p79_p4, %s3033_s25, 1 }
  0x43   : > { %s2625_s30 = scalar_lea.hbm %s3008_s2, %s1770_s7  ;;  %s216_s11 = sshll.u32 %s207_s26, 4  ;;  %s2627_s11 = int_to_ptr.vmem [resolvable:$true] %s216_s11 }
  0x44   : > { %s81_s12 = ssub.s32 %s78_s27, %s80_s8  ;;  %s2633_s5 = scalar_lea.sflag [#allocation5], %s203_s29 }
  0x45   : > { %p2629_p11 = scmp.eq.s32.totalorder %s81_s12, 0  ;;  %s2335_s15 = scalar_lea.hbm %s2625_s30, 1024 }
  0x46   : > { %p2336_p5 = scmp.ne.s32.totalorder %s2625_s30, %s2335_s15  ;;  %p2337_p7 = pneg %p2548_p12 }
  0x47   : > { %s2340_s27 = scalar_lea.hbm %s3008_s2, 2048  ;;  %p2341_p13 = scmp.lt.u32.totalorder %s2625_s30, %s3008_s2 }
  0x48   : > { %p2338_p9 = pnand %p2337_p7, %p2336_p5  ;;  %p2342_p1 = scmp.lt.u32.totalorder %s2340_s27, %s2335_s15 }
  0x49   : > { %p2344_p6 = scmp.lt.u32.totalorder %s2335_s15, %s2625_s30 }
  0x4a   : > { %p2339_p10 = pneg %p2338_p9  ;;  %p2343_p3 = por %p2342_p1, %p2341_p13 }
  0x4c   : > { %p2345_p0 = por %p2344_p6, %p2343_p3 }
  0x4e   : > { %p2346_p2 = pnand %p2345_p0, %p2339_p10 }
  0x50   : > { %2349 = shalt.err (!%p2346_p2)
}
  0x51   : > { %s2350_s29 = scalar_lea.vmem %s2627_s11, 1024  ;;  %s2459_s10 = smov [#allocation9]  }
  0x52   : > { %p2351_p4 = scmp.ne.s32.totalorder %s2627_s11, %s2350_s29  ;;  %s2355_s26 = sshll.u32 %s2459_s10, 4  ;;  %s2356_s26 = int_to_ptr.vmem [resolvable:$false] %s2355_s26 }
  0x53   : > { %s2357_s12 = scalar_lea.vmem %s2356_s26, 2048  ;;  %p2358_p8 = scmp.lt.s32.totalorder %s2627_s11, %s2356_s26 }
  0x54   : > { %p2353_p5 = pnand %p2351_p4, %p2337_p7  ;;  %p2359_p13 = scmp.lt.s32.totalorder %s2357_s12, %s2350_s29 }
  0x56   : > { %p2354_p9 = pneg %p2353_p5  ;;  %p2360_p1 = por %p2359_p13, %p2358_p8 }
  0x58   : > { %p2361_p3 = pnand %p2360_p1, %p2354_p9 }
  0x5a   : > { %2364 = shalt.err (!%p2361_p3)
}
  0x5b   : > { %2179 = dma.hbm_to_vmem [thread:$0]  (!%p2548_p12), %s2625_s30, 1024, %s2627_s11, %s2633_s5, %s2457_s13, %s2457_s13, %s2458_s14  }
  0x5c   : > { %s3019_s15 = sadd.s32 1, %s2441_s17  ;;  %p3020_p8 = scmp.ne.s32.totalorder %s3015_s24, 0 }
  0x5d   : > { %s2669_s7 = scalar_select %p2629_p11, %s2441_s17, %s3019_s15  }
  0x5e   : > { %234 = sbr.rel (%p3020_p8) target bundleno = 1712 (0x6b0), region = 36  ;;  %p3021_p7 = scmp.eq.s32.totalorder (!%p3020_p8), %s2517_s21, 0 }
  0x65   : > { %2416 = dma.done.wait (%p3021_p7), [#allocation5], 1024   ;;  %p3022_p10 = pmov %p3021_p7 }
  0x66   : > { %p3023_p6 = pmov %p3021_p7 }
  0x67   : > { %2418 = vsyncadd (%p3022_p10), [#allocation5], 4294966272 }
  0x68   : > { %2420 = dma.done.wait (%p3023_p6), [#allocation8], 1024   ;;  %p3024_p0 = pmov %p3023_p6 }
  0x69   : > { %s244_s22 = sand.u32 1, %s2517_s21   ;;  %s246_s28 = sand.u32 1, %s2437_s16  }
  0x6a   : > { %2422 = vsyncadd (%p3024_p0), [#allocation8], 4294966272  ;;  %s1699_s13 = sshll.u32 %s246_s28, 6  ;;  %s245_s24 = scalar_lea.sflag [#allocation5], %s244_s22 }
  0x6b   : > { %s2683_s14 = scalar_lea.vmem [#allocation9], %s1699_s13  ;;  %p3025_p12 = scmp.ne.s32.totalorder %s3014_s23, 0 }
  0x6d   : > { %2424 = dma.done.wait (%p3025_p12), %s245_s24, 1024  }
  0x6e   : > { %2426 = vsyncadd (%p3025_p12), %s245_s24, 4294966272  ;;  %p278_p11 = scmp.lt.s32.totalorder %s2445_s18, 2  ;;  %v2691_v0 = vld [vmem:[#allocation7] sm:$0xf]  ;;  %v2693_v1 = vld [vmem:[#allocation7 + $0x4] sm:$0xf] }
  0x6f   : > { %v2695_v2 = vld [vmem:[#allocation7 + $0x8] sm:$0xf]  ;;  %v2697_v3 = vld [vmem:[#allocation7 + $0xc] sm:$0xf]  ;;  %v2699_v4 = vld [vmem:[#allocation7 + $0x10] sm:$0xf] }
  0x70   : > { %s279_s30 = scalar_select %p278_p11, %s2445_s18, 2  ;;  %v2701_v5 = vld [vmem:[#allocation7 + $0x14] sm:$0xf]  ;;  %v2706_v6 = vld [vmem:[#allocation7 + $0x18] sm:$0xf] }
  0x71   : > { %v2708_v7 = vld [vmem:[#allocation7 + $0x1c] sm:$0xf]  ;;  %v2710_v8 = vld [vmem:[#allocation7 + $0x20] sm:$0xf]  ;;  %v2712_v9 = vld [vmem:[#allocation7 + $0x24] sm:$0xf] }
  0x72   : > { %s280_s23 = scalar_lea.vmem %s3009_s3, %s279_s30  ;;  %v2714_v10 = vld [vmem:[#allocation7 + $0x28] sm:$0xf]  ;;  %v2716_v11 = vld [vmem:[#allocation7 + $0x2c] sm:$0xf]  ;;  %v2718_v12 = vld [vmem:[#allocation7 + $0x30] sm:$0xf] }
  0x73   : > { %v2720_v13 = vld [vmem:[#allocation7 + $0x34] sm:$0xf]  ;;  %v2722_v14 = vld [vmem:[#allocation7 + $0x38] sm:$0xf]  ;;  %v2724_v15 = vld [vmem:[#allocation7 + $0x3c] sm:$0xf] }
  0x74   : > { %v2726_v16 = vld [vmem:[%s280_s23] sm:$0x1]  ;;  %p1700_p2 = scmp.ne.s32.totalorder %s2445_s18, 0 }
  0x75   : > { %v2247_v17 = vld [vmem:[#allocation4] sm:$0xff] (!%p1700_p2)   ;;  %v2248_v18 = vld [vmem:[#allocation4 + $0x8] sm:$0xff] (!%p1700_p2)   ;;  %v1701_v19 = vcombine.low (!%p1700_p2), %v2691_v0, %v2693_v1  ;;  %v1705_v20 = vcombine.low (!%p1700_p2), %v2710_v8, %v2712_v9  ;;  %v2249_v21 = vld [vmem:[#allocation4 + $0x10] sm:$0xff] (!%p1700_p2)   ;;  %v1702_v27 = vcombine.low (!%p1700_p2), %v2695_v2, %v2697_v3  ;;  %v1706_v28 = vcombine.low (!%p1700_p2), %v2714_v10, %v2716_v11  ;;  %p1717_p4 = scmp.ne.s32.totalorder (!%p1700_p2), %s2445_s18, 2 }
  0x76   : > { %310 = sbr.rel (%p1700_p2) target bundleno = 636 (0x27c), region = 52  ;;  %1867 = vmatprep.subr.bf16.mxu0 (!%p1700_p2), %v2247_v17  ;;  %2059 = vmatprep.subr.bf16.mxu1 (!%p1700_p2), %v2247_v17  ;;  %v2250_v22 = vld [vmem:[#allocation4 + $0x18] sm:$0xff] (!%p1700_p2)   ;;  %v2251_v23 = vld [vmem:[#allocation4 + $0x20] sm:$0xff] (!%p1700_p2)   ;;  %v2252_v24 = vld [vmem:[#allocation4 + $0x28] sm:$0xff] (!%p1700_p2)   ;;  %v1703_v29 = vcombine.low (!%p1700_p2), %v2699_v4, %v2701_v5  ;;  %v1707_v30 = vcombine.low (!%p1700_p2), %v2718_v12, %v2720_v13  ;;  %v1704_v31 = vcombine.low (!%p1700_p2), %v2706_v6, %v2708_v7  ;;  %v328_v33 = vlaneseq (!%p1700_p2) }
  0x77   : > { %1868 = vmatpush3.bf16.msra.mxu0 (!%p1700_p2), %v2247_v17  ;;  %2067 = vmatpush3.bf16.msra.mxu1 (!%p1700_p2), %v2247_v17  ;;  %v2253_v25 = vld [vmem:[#allocation4 + $0x30] sm:$0xff] (!%p1700_p2)   ;;  %v2254_v26 = vld [vmem:[#allocation4 + $0x38] sm:$0xff] (!%p1700_p2)   ;;  %v1708_v32 = vcombine.low (!%p1700_p2), %v2722_v14, %v2724_v15 }
  0x78   : > { %1869 = vmatprep.subr.bf16.mxu0 (!%p1700_p2), %v2248_v18  ;;  %2060 = vmatprep.subr.bf16.mxu1 (!%p1700_p2), %v2248_v18  ;;  %v329_v34 = vshrl.u32 (!%p1700_p2), %v328_v33, 7 }
  0x79   : > { %1883 = vmatprep.mubr.bf16.mxu0 (!%p1700_p2), %v1701_v19  ;;  %1891 = vmatprep.mubr.bf16.mxu1 (!%p1700_p2), %v1705_v20 }
  0x7a   : > { %v330_v35 = vsub.s32 (!%p1700_p2), 0, %v329_v34 }
  0x7b   : > { %1870 = vmatpush3.bf16.msra.mxu0 (!%p1700_p2), %v2248_v18  ;;  %2068 = vmatpush3.bf16.msra.mxu1 (!%p1700_p2), %v2248_v18 }
  0x7c   : > { %1871 = vmatprep.subr.bf16.mxu0 (!%p1700_p2), %v2249_v21  ;;  %2061 = vmatprep.subr.bf16.mxu1 (!%p1700_p2), %v2249_v21  ;;  %v331_v36 = vrot.slane (!%p1700_p2), %v2726_v16, %v330_v35 }
  0x7f   : > { %1872 = vmatpush3.bf16.msra.mxu0 %v2249_v21  ;;  %2069 = vmatpush3.bf16.msra.mxu1 %v2249_v21 }
  0x80   : > { %1873 = vmatprep.subr.bf16.mxu0 %v2250_v22  ;;  %2062 = vmatprep.subr.bf16.mxu1 %v2250_v22 }
  0x83   : > { %1874 = vmatpush3.bf16.msra.mxu0 %v2250_v22  ;;  %2070 = vmatpush3.bf16.msra.mxu1 %v2250_v22 }
  0x84   : > { %1875 = vmatprep.subr.bf16.mxu0 %v2251_v23  ;;  %2063 = vmatprep.subr.bf16.mxu1 %v2251_v23 }
  0x87   : > { %1876 = vmatpush3.bf16.msra.mxu0 %v2251_v23  ;;  %2071 = vmatpush3.bf16.msra.mxu1 %v2251_v23 }
  0x88   : > { %1877 = vmatprep.subr.bf16.mxu0 %v2252_v24  ;;  %2064 = vmatprep.subr.bf16.mxu1 %v2252_v24 }
  0x8b   : > { %1878 = vmatpush3.bf16.msra.mxu0 %v2252_v24  ;;  %2072 = vmatpush3.bf16.msra.mxu1 %v2252_v24 }
  0x8c   : > { %1879 = vmatprep.subr.bf16.mxu0 %v2253_v25  ;;  %2065 = vmatprep.subr.bf16.mxu1 %v2253_v25 }
  0x8f   : > { %1880 = vmatpush3.bf16.msra.mxu0 %v2253_v25  ;;  %2073 = vmatpush3.bf16.msra.mxu1 %v2253_v25 }
  0x90   : > { %1881 = vmatprep.subr.bf16.mxu0 %v2254_v26  ;;  %2066 = vmatprep.subr.bf16.mxu1 %v2254_v26 }
  0x93   : > { %1882 = vmatpush3.bf16.msra.mxu0 %v2254_v26  ;;  %2074 = vmatpush3.bf16.msra.mxu1 %v2254_v26 }
  0x96   : > { %1884 = vmatmul.mubr.bf16.vlgmr.msra.gmra.mrb[0].mxu0 %v1702_v27  ;;  %1892 = vmatmul.mubr.bf16.vlgmr.msra.gmra.mrb[0].mxu1 %v1706_v28 }
  0x97   : > { %1887 = vmatprep.mubr.bf16.mxu0 %v1703_v29  ;;  %1895 = vmatprep.mubr.bf16.mxu1 %v1707_v30 }
  0x9e   : > { %1888 = vmatmul.mubr.bf16.gmra.mrb[4].mxu0 %v1704_v31  ;;  %1896 = vmatmul.mubr.bf16.gmra.mrb[4].mxu1 %v1708_v32 }
 0x169   : > { %v1885_v37 = vpop.f32.mrb[0].mxu0  ;;  %v1893_v38 = vpop.f32.mrb[0].mxu1 }
 0x16a   : > { %v2746_v39 = vadd.f32 %v1885_v37, %v331_v36  ;;  %v2748_v40 = vadd.f32 %v1893_v38, %v331_v36  ;;  %v463_v41 = vpop.f32.mrb[1].mxu0  ;;  %v495_v42 = vpop.f32.mrb[1].mxu1 }
 0x16b   : > { %v464_v43 = vadd.f32 %v463_v41, %v331_v36  ;;  %v496_v44 = vadd.f32 %v495_v42, %v331_v36  ;;  %v1886_v45 = vpop.f32.mrb[2].mxu0  ;;  %v1894_v46 = vpop.f32.mrb[2].mxu1 }
 0x16c   : > { %v2750_v47 = vadd.f32 %v1886_v45, %v331_v36  ;;  %v2752_v48 = vadd.f32 %v1894_v46, %v331_v36  ;;  %v466_v49 = vpop.f32.mrb[3].mxu0  ;;  %v498_v50 = vpop.f32.mrb[3].mxu1  ;;  %532 = vst [vmem:[#allocation10 + $0x10] sm:$0xff] (!%p1717_p4), %v2746_v39  ;;  %540 = vst [vmem:[#allocation10 + $0x50] sm:$0xff] (!%p1717_p4), %v2748_v40 }
 0x16d   : > { %v467_v51 = vadd.f32 %v466_v49, %v331_v36  ;;  %v499_v52 = vadd.f32 %v498_v50, %v331_v36  ;;  %530 = vst [vmem:[#allocation10] sm:$0xff] (!%p1717_p4), %v464_v43  ;;  %538 = vst [vmem:[#allocation10 + $0x40] sm:$0xff] (!%p1717_p4), %v496_v44 }
 0x16e   : > { %533 = vst [vmem:[#allocation10 + $0x18] sm:$0xff] (!%p1717_p4), %v2750_v47  ;;  %541 = vst [vmem:[#allocation10 + $0x58] sm:$0xff] (!%p1717_p4), %v2752_v48 }
 0x16f   : > { %529 = sbr.rel (%p1717_p4) target bundleno = 376 (0x178), region = 56  ;;  %531 = vst [vmem:[#allocation10 + $0x8] sm:$0xff] (!%p1717_p4), %v467_v51  ;;  %539 = vst [vmem:[#allocation10 + $0x48] sm:$0xff] (!%p1717_p4), %v499_v52 }
 0x171   : > { %v1889_v53 = vpop.f32.mrb[4].mxu0  ;;  %v1897_v54 = vpop.f32.mrb[4].mxu1 }
 0x172   : > { %v2754_v55 = vadd.f32 %v1889_v53, %v331_v36  ;;  %v2756_v56 = vadd.f32 %v1897_v54, %v331_v36  ;;  %v479_v57 = vpop.f32.mrb[5].mxu0  ;;  %v511_v58 = vpop.f32.mrb[5].mxu1 }
 0x173   : > { %v2758_v59 = vadd.f32 %v479_v57, %v331_v36  ;;  %v2760_v60 = vadd.f32 %v511_v58, %v331_v36  ;;  %v1890_v61 = vpop.f32.mrb[6].mxu0  ;;  %v1898_v62 = vpop.f32.mrb[6].mxu1 }
 0x174   : > { %v2762_v63 = vadd.f32 %v1890_v61, %v331_v36  ;;  %v2764_v17 = vadd.f32 %v1898_v62, %v331_v36  ;;  %v482_v18 = vpop.f32.mrb[7].mxu0  ;;  %v514_v19 = vpop.f32.mrb[7].mxu1  ;;  %536 = vst [vmem:[#allocation10 + $0x30] sm:$0xff] (!%p1717_p4), %v2754_v55  ;;  %544 = vst [vmem:[#allocation10 + $0x70] sm:$0xff] (!%p1717_p4), %v2756_v56 }
 0x175   : > { %v2766_v20 = vadd.f32 %v482_v18, %v331_v36  ;;  %v2768_v21 = vadd.f32 %v514_v19, %v331_v36  ;;  %534 = vst [vmem:[#allocation10 + $0x20] sm:$0xff] (!%p1717_p4), %v2758_v59  ;;  %542 = vst [vmem:[#allocation10 + $0x60] sm:$0xff] (!%p1717_p4), %v2760_v60 }
 0x176   : > { %537 = vst [vmem:[#allocation10 + $0x38] sm:$0xff] %v2762_v63  ;;  %545 = vst [vmem:[#allocation10 + $0x78] sm:$0xff] %v2764_v17 }
 0x177   : > { %535 = vst [vmem:[#allocation10 + $0x28] sm:$0xff] %v2766_v20  ;;  %543 = vst [vmem:[#allocation10 + $0x68] sm:$0xff] %v2768_v21 }
 0x178 PF: > { %p1718_p5 = scmp.ge.s32.totalorder %s2445_s18, 2 }
 0x179   : > { %v2255_v22 = vld [vmem:[%s2683_s14] sm:$0xff] (!%p1718_p5)   ;;  %v550_v23 = vmax.f32 (!%p1718_p5), %v464_v43, 0.0  ;;  %v2256_v24 = vld [vmem:[%s2683_s14 + $0x8] sm:$0xff] (!%p1718_p5)   ;;  %v551_v25 = vmax.f32 (!%p1718_p5), %v467_v51, 0.0  ;;  %v558_v26 = vmax.f32 (!%p1718_p5), %v496_v44, 0.0  ;;  %v559_v28 = vmax.f32 (!%p1718_p5), %v499_v52, 0.0 }
 0x17a   : > { %549 = sbr.rel (%p1718_p5) target bundleno = 636 (0x27c), region = 60  ;;  %1899 = vmatprep.subr.bf16.mxu0 (!%p1718_p5), %v2255_v22  ;;  %2075 = vmatprep.subr.bf16.mxu1 (!%p1718_p5), %v2255_v22  ;;  %v2257_v29 = vld [vmem:[%s2683_s14 + $0x10] sm:$0xff] (!%p1718_p5)   ;;  %v2258_v31 = vld [vmem:[%s2683_s14 + $0x18] sm:$0xff] (!%p1718_p5)   ;;  %v2259_v32 = vld [vmem:[%s2683_s14 + $0x20] sm:$0xff] (!%p1718_p5)   ;;  %v552_v36 = vmax.f32 (!%p1718_p5), %v2746_v39, 0.0  ;;  %v553_v37 = vmax.f32 (!%p1718_p5), %v2750_v47, 0.0 }
 0x17b   : > { %1900 = vmatpush3.bf16.msra.mxu0 (!%p1718_p5), %v2255_v22  ;;  %2083 = vmatpush3.bf16.msra.mxu1 (!%p1718_p5), %v2255_v22  ;;  %v566_v27 = vpack.c.bf16 (!%p1718_p5), %v551_v25, %v550_v23  ;;  %v570_v30 = vpack.c.bf16 (!%p1718_p5), %v559_v28, %v558_v26  ;;  %v2260_v33 = vld [vmem:[%s2683_s14 + $0x28] sm:$0xff] (!%p1718_p5)   ;;  %v2261_v34 = vld [vmem:[%s2683_s14 + $0x30] sm:$0xff] (!%p1718_p5)   ;;  %v2262_v35 = vld [vmem:[%s2683_s14 + $0x38] sm:$0xff] (!%p1718_p5)   ;;  %v560_v38 = vmax.f32 (!%p1718_p5), %v2748_v40, 0.0  ;;  %v561_v41 = vmax.f32 (!%p1718_p5), %v2752_v48, 0.0 }
 0x17c   : > { %1901 = vmatprep.subr.bf16.mxu0 (!%p1718_p5), %v2256_v24  ;;  %2076 = vmatprep.subr.bf16.mxu1 (!%p1718_p5), %v2256_v24  ;;  %v554_v42 = vmax.f32 (!%p1718_p5), %v2758_v59, 0.0  ;;  %v555_v43 = vmax.f32 (!%p1718_p5), %v2766_v20, 0.0  ;;  %v562_v44 = vmax.f32 (!%p1718_p5), %v2760_v60, 0.0  ;;  %v563_v45 = vmax.f32 (!%p1718_p5), %v2768_v21, 0.0 }
 0x17d   : > { %1915 = vmatprep.mubr.bf16.mxu0 (!%p1718_p5), %v566_v27  ;;  %1923 = vmatprep.mubr.bf16.mxu1 (!%p1718_p5), %v570_v30  ;;  %v567_v46 = vpack.c.bf16 (!%p1718_p5), %v553_v37, %v552_v36  ;;  %v571_v39 = vpack.c.bf16 (!%p1718_p5), %v561_v41, %v560_v38  ;;  %v556_v48 = vmax.f32 (!%p1718_p5), %v2754_v55, 0.0  ;;  %v557_v49 = vmax.f32 (!%p1718_p5), %v2762_v63, 0.0 }
 0x17e   : > { %v568_v47 = vpack.c.bf16 (!%p1718_p5), %v555_v43, %v554_v42  ;;  %v572_v40 = vpack.c.bf16 (!%p1718_p5), %v563_v45, %v562_v44  ;;  %v564_v50 = vmax.f32 (!%p1718_p5), %v2756_v56, 0.0  ;;  %v565_v51 = vmax.f32 (!%p1718_p5), %v2764_v17, 0.0 }
 0x17f   : > { %1902 = vmatpush3.bf16.msra.mxu0 (!%p1718_p5), %v2256_v24  ;;  %2084 = vmatpush3.bf16.msra.mxu1 (!%p1718_p5), %v2256_v24  ;;  %v569_v52 = vpack.c.bf16 (!%p1718_p5), %v557_v49, %v556_v48 }
 0x180   : > { %1903 = vmatprep.subr.bf16.mxu0 (!%p1718_p5), %v2257_v29  ;;  %2077 = vmatprep.subr.bf16.mxu1 (!%p1718_p5), %v2257_v29  ;;  %v573_v53 = vpack.c.bf16 (!%p1718_p5), %v565_v51, %v564_v50 }
 0x183   : > { %1904 = vmatpush3.bf16.msra.mxu0 %v2257_v29  ;;  %2085 = vmatpush3.bf16.msra.mxu1 %v2257_v29 }
 0x184   : > { %1905 = vmatprep.subr.bf16.mxu0 %v2258_v31  ;;  %2078 = vmatprep.subr.bf16.mxu1 %v2258_v31 }
 0x187   : > { %1906 = vmatpush3.bf16.msra.mxu0 %v2258_v31  ;;  %2086 = vmatpush3.bf16.msra.mxu1 %v2258_v31 }
 0x188   : > { %1907 = vmatprep.subr.bf16.mxu0 %v2259_v32  ;;  %2079 = vmatprep.subr.bf16.mxu1 %v2259_v32 }
 0x18b   : > { %1908 = vmatpush3.bf16.msra.mxu0 %v2259_v32  ;;  %2087 = vmatpush3.bf16.msra.mxu1 %v2259_v32 }
 0x18c   : > { %1909 = vmatprep.subr.bf16.mxu0 %v2260_v33  ;;  %2080 = vmatprep.subr.bf16.mxu1 %v2260_v33 }
 0x18f   : > { %1910 = vmatpush3.bf16.msra.mxu0 %v2260_v33  ;;  %2088 = vmatpush3.bf16.msra.mxu1 %v2260_v33 }
 0x190   : > { %1911 = vmatprep.subr.bf16.mxu0 %v2261_v34  ;;  %2081 = vmatprep.subr.bf16.mxu1 %v2261_v34 }
 0x193   : > { %1912 = vmatpush3.bf16.msra.mxu0 %v2261_v34  ;;  %2089 = vmatpush3.bf16.msra.mxu1 %v2261_v34 }
 0x194   : > { %1913 = vmatprep.subr.bf16.mxu0 %v2262_v35  ;;  %2082 = vmatprep.subr.bf16.mxu1 %v2262_v35 }
 0x197   : > { %1914 = vmatpush3.bf16.msra.mxu0 %v2262_v35  ;;  %2090 = vmatpush3.bf16.msra.mxu1 %v2262_v35 }
 0x19a   : > { %1916 = vmatmul.mubr.bf16.vlgmr.msra.gmra.mrb[0].mxu0 %v567_v46  ;;  %1924 = vmatmul.mubr.bf16.vlgmr.msra.gmra.mrb[0].mxu1 %v571_v39 }
 0x19b   : > { %1919 = vmatprep.mubr.bf16.mxu0 %v568_v47  ;;  %1927 = vmatprep.mubr.bf16.mxu1 %v572_v40 }
 0x1a2   : > { %1920 = vmatmul.mubr.bf16.gmra.mrb[4].mxu0 %v569_v52  ;;  %1928 = vmatmul.mubr.bf16.gmra.mrb[4].mxu1 %v573_v53 }
 0x26d   : > { %v1917_v54 = vpop.f32.mrb[0].mxu0  ;;  %v1925_v57 = vpop.f32.mrb[0].mxu1 }
 0x26e   : > { %v672_v58 = vpop.f32.mrb[1].mxu0  ;;  %v704_v59 = vpop.f32.mrb[1].mxu1 }
 0x26f   : > { %v1918_v60 = vpop.f32.mrb[2].mxu0  ;;  %v1926_v61 = vpop.f32.mrb[2].mxu1 }
 0x270   : > { %v736_v62 = vpack.c.bf16 %v1918_v60, %v1917_v54  ;;  %v740_v55 = vpack.c.bf16 %v1926_v61, %v1925_v57  ;;  %v675_v18 = vpop.f32.mrb[3].mxu0  ;;  %v707_v63 = vpop.f32.mrb[3].mxu1 }
 0x271   : > { %v735_v19 = vpack.c.bf16 %v675_v18, %v672_v58  ;;  %v739_v56 = vpack.c.bf16 %v707_v63, %v704_v59 }
 0x272   : > { %748 = vst [vmem:[#allocation3 + $0x8] sm:$0xff] %v736_v62  ;;  %752 = vst [vmem:[#allocation3 + $0x28] sm:$0xff] %v740_v55 }
 0x273   : > { %747 = vst [vmem:[#allocation3] sm:$0xff] %v735_v19  ;;  %751 = vst [vmem:[#allocation3 + $0x20] sm:$0xff] %v739_v56 }
 0x275   : > { %v1921_v17 = vpop.f32.mrb[4].mxu0  ;;  %v1929_v20 = vpop.f32.mrb[4].mxu1 }
 0x276   : > { %v688_v21 = vpop.f32.mrb[5].mxu0  ;;  %v720_v22 = vpop.f32.mrb[5].mxu1 }
 0x277   : > { %v1922_v23 = vpop.f32.mrb[6].mxu0  ;;  %v1930_v24 = vpop.f32.mrb[6].mxu1 }
 0x278   : > { %v738_v25 = vpack.c.bf16 %v1922_v23, %v1921_v17  ;;  %v742_v26 = vpack.c.bf16 %v1930_v24, %v1929_v20  ;;  %v691_v27 = vpop.f32.mrb[7].mxu0  ;;  %v723_v28 = vpop.f32.mrb[7].mxu1 }
 0x279   : > { %v737_v29 = vpack.c.bf16 %v691_v27, %v688_v21  ;;  %v741_v30 = vpack.c.bf16 %v723_v28, %v720_v22 }
 0x27a   : > { %750 = vst [vmem:[#allocation3 + $0x18] sm:$0xff] %v738_v25  ;;  %754 = vst [vmem:[#allocation3 + $0x38] sm:$0xff] %v742_v26 }
 0x27b   : > { %749 = vst [vmem:[#allocation3 + $0x10] sm:$0xff] %v737_v29  ;;  %753 = vst [vmem:[#allocation3 + $0x30] sm:$0xff] %v741_v30 }
 0x27c PF: > { %p756_p9 = scmp.lt.s32.totalorder %s2445_s18, 0  ;;  %s757_s6 = ssub.s32 0, %s2445_s18 }
 0x27d   : > { %s1727_s27 = smin.u32 %s2445_s18, %s757_s6  ;;  %p755_p1 = scmp.gt.s32.totalorder %s2445_s18, 0 }
 0x27e   : > { %s759_s8 = sand.u32 1, %s1727_s27  }
 0x27f   : > { %s760_s9 = ssub.s32 0, %s759_s8 }
 0x280   : > { %s3035_s9 = smov (!%p756_p9, %s760_s9), %s759_s8 }
 0x281   : > { %p1729_p13 = scmp.lt.s32.totalorder %s3035_s9, 0  ;;  %s766_s29 = sadd.s32 2, %s3035_s9 }
 0x283   : > { %s3037_s29 = smov (!%p1729_p13, %s766_s29), %s3035_s9 }
 0x284   : > { %p768_p3 = scmp.eq.s32.totalorder %s3037_s29, 1 }
 0x286   : > { %p769_p8 = pnand %p768_p3, %p755_p1 }
 0x287   : > { %v773_v31 = vld [vmem:[#allocation3] sm:$0xff] (!%p769_p8)  ;;  %v774_v32 = vld [vmem:[#allocation3 + $0x8] sm:$0xff] (!%p769_p8)  ;;  %v1730_v33 = vcombine.low (!%p769_p8), %v2691_v0, %v2693_v1  ;;  %v1734_v34 = vcombine.low (!%p769_p8), %v2710_v8, %v2712_v9  ;;  %v775_v35 = vld [vmem:[#allocation3 + $0x10] sm:$0xff] (!%p769_p8)  ;;  %v1731_v43 = vcombine.low (!%p769_p8), %v2695_v2, %v2697_v3  ;;  %v1735_v44 = vcombine.low (!%p769_p8), %v2714_v10, %v2716_v11  ;;  %p1738_p7 = scmp.ne.s32.totalorder (!%p769_p8), %s2445_s18, 2 }
 0x288   : > { %772 = sbr.rel (%p769_p8) target bundleno = 1166 (0x48e), region = 64  ;;  %1931 = vmatprep.subr.bf16.mxu0 (!%p769_p8), %v773_v31  ;;  %2091 = vmatprep.subr.bf16.mxu1 (!%p769_p8), %v773_v31  ;;  %v776_v36 = vld [vmem:[#allocation3 + $0x18] sm:$0xff] (!%p769_p8)  ;;  %v777_v37 = vld [vmem:[#allocation3 + $0x20] sm:$0xff] (!%p769_p8)  ;;  %v778_v38 = vld [vmem:[#allocation3 + $0x28] sm:$0xff] (!%p769_p8)  ;;  %v1732_v45 = vcombine.low (!%p769_p8), %v2699_v4, %v2701_v5  ;;  %v1736_v46 = vcombine.low (!%p769_p8), %v2718_v12, %v2720_v13  ;;  %v1733_v39 = vcombine.low (!%p769_p8), %v2706_v6, %v2708_v7  ;;  %v782_v40 = vlaneseq (!%p769_p8) }
 0x289   : > { %1932 = vmatpush3.bf16.msra.mxu0 (!%p769_p8), %v773_v31  ;;  %2099 = vmatpush3.bf16.msra.mxu1 (!%p769_p8), %v773_v31  ;;  %v779_v41 = vld [vmem:[#allocation3 + $0x30] sm:$0xff] (!%p769_p8)  ;;  %v780_v42 = vld [vmem:[#allocation3 + $0x38] sm:$0xff] (!%p769_p8)  ;;  %v1737_v47 = vcombine.low (!%p769_p8), %v2722_v14, %v2724_v15 }
 0x28a   : > { %1933 = vmatprep.subr.bf16.mxu0 (!%p769_p8), %v774_v32  ;;  %2092 = vmatprep.subr.bf16.mxu1 (!%p769_p8), %v774_v32  ;;  %v783_v48 = vshrl.u32 (!%p769_p8), %v782_v40, 7 }
 0x28b   : > { %1947 = vmatprep.mubr.bf16.mxu0 (!%p769_p8), %v1730_v33  ;;  %1955 = vmatprep.mubr.bf16.mxu1 (!%p769_p8), %v1734_v34 }
 0x28c   : > { %v784_v49 = vsub.s32 (!%p769_p8), 0, %v783_v48 }
 0x28d   : > { %1934 = vmatpush3.bf16.msra.mxu0 (!%p769_p8), %v774_v32  ;;  %2100 = vmatpush3.bf16.msra.mxu1 (!%p769_p8), %v774_v32 }
 0x28e   : > { %1935 = vmatprep.subr.bf16.mxu0 (!%p769_p8), %v775_v35  ;;  %2093 = vmatprep.subr.bf16.mxu1 (!%p769_p8), %v775_v35  ;;  %v785_v50 = vrot.slane (!%p769_p8), %v2726_v16, %v784_v49 }
 0x291   : > { %1936 = vmatpush3.bf16.msra.mxu0 %v775_v35  ;;  %2101 = vmatpush3.bf16.msra.mxu1 %v775_v35 }
 0x292   : > { %1937 = vmatprep.subr.bf16.mxu0 %v776_v36  ;;  %2094 = vmatprep.subr.bf16.mxu1 %v776_v36 }
 0x295   : > { %1938 = vmatpush3.bf16.msra.mxu0 %v776_v36  ;;  %2102 = vmatpush3.bf16.msra.mxu1 %v776_v36 }
 0x296   : > { %1939 = vmatprep.subr.bf16.mxu0 %v777_v37  ;;  %2095 = vmatprep.subr.bf16.mxu1 %v777_v37 }
 0x299   : > { %1940 = vmatpush3.bf16.msra.mxu0 %v777_v37  ;;  %2103 = vmatpush3.bf16.msra.mxu1 %v777_v37 }
 0x29a   : > { %1941 = vmatprep.subr.bf16.mxu0 %v778_v38  ;;  %2096 = vmatprep.subr.bf16.mxu1 %v778_v38 }
 0x29d   : > { %1942 = vmatpush3.bf16.msra.mxu0 %v778_v38  ;;  %2104 = vmatpush3.bf16.msra.mxu1 %v778_v38 }
 0x29e   : > { %1943 = vmatprep.subr.bf16.mxu0 %v779_v41  ;;  %2097 = vmatprep.subr.bf16.mxu1 %v779_v41 }
 0x2a1   : > { %1944 = vmatpush3.bf16.msra.mxu0 %v779_v41  ;;  %2105 = vmatpush3.bf16.msra.mxu1 %v779_v41 }
 0x2a2   : > { %1945 = vmatprep.subr.bf16.mxu0 %v780_v42  ;;  %2098 = vmatprep.subr.bf16.mxu1 %v780_v42 }
 0x2a5   : > { %1946 = vmatpush3.bf16.msra.mxu0 %v780_v42  ;;  %2106 = vmatpush3.bf16.msra.mxu1 %v780_v42 }
 0x2a8   : > { %1948 = vmatmul.mubr.bf16.vlgmr.msra.gmra.mrb[0].mxu0 %v1731_v43  ;;  %1956 = vmatmul.mubr.bf16.vlgmr.msra.gmra.mrb[0].mxu1 %v1735_v44 }
 0x2a9   : > { %1951 = vmatprep.mubr.bf16.mxu0 %v1732_v45  ;;  %1959 = vmatprep.mubr.bf16.mxu1 %v1736_v46 }
 0x2b0   : > { %1952 = vmatmul.mubr.bf16.gmra.mrb[4].mxu0 %v1733_v39  ;;  %1960 = vmatmul.mubr.bf16.gmra.mrb[4].mxu1 %v1737_v47 }
 0x37b   : > { %v1949_v51 = vpop.f32.mrb[0].mxu0  ;;  %v1957_v52 = vpop.f32.mrb[0].mxu1 }
 0x37c   : > { %v2830_v53 = vadd.f32 %v1949_v51, %v785_v50  ;;  %v2832_v54 = vadd.f32 %v1957_v52, %v785_v50  ;;  %v869_v57 = vpop.f32.mrb[1].mxu0  ;;  %v901_v58 = vpop.f32.mrb[1].mxu1 }
 0x37d   : > { %v870_v59 = vadd.f32 %v869_v57, %v785_v50  ;;  %v902_v60 = vadd.f32 %v901_v58, %v785_v50  ;;  %v1950_v61 = vpop.f32.mrb[2].mxu0  ;;  %v1958_v62 = vpop.f32.mrb[2].mxu1 }
 0x37e   : > { %v2834_v55 = vadd.f32 %v1950_v61, %v785_v50  ;;  %v2836_v18 = vadd.f32 %v1958_v62, %v785_v50  ;;  %v872_v63 = vpop.f32.mrb[3].mxu0  ;;  %v904_v19 = vpop.f32.mrb[3].mxu1  ;;  %938 = vst [vmem:[#allocation10 + $0x10] sm:$0xff] (!%p1738_p7), %v2830_v53  ;;  %946 = vst [vmem:[#allocation10 + $0x50] sm:$0xff] (!%p1738_p7), %v2832_v54 }
 0x37f   : > { %v873_v56 = vadd.f32 %v872_v63, %v785_v50  ;;  %v905_v17 = vadd.f32 %v904_v19, %v785_v50  ;;  %936 = vst [vmem:[#allocation10] sm:$0xff] (!%p1738_p7), %v870_v59  ;;  %944 = vst [vmem:[#allocation10 + $0x40] sm:$0xff] (!%p1738_p7), %v902_v60 }
 0x380   : > { %939 = vst [vmem:[#allocation10 + $0x18] sm:$0xff] (!%p1738_p7), %v2834_v55  ;;  %947 = vst [vmem:[#allocation10 + $0x58] sm:$0xff] (!%p1738_p7), %v2836_v18 }
 0x381   : > { %935 = sbr.rel (%p1738_p7) target bundleno = 906 (0x38a), region = 68  ;;  %937 = vst [vmem:[#allocation10 + $0x8] sm:$0xff] (!%p1738_p7), %v873_v56  ;;  %945 = vst [vmem:[#allocation10 + $0x48] sm:$0xff] (!%p1738_p7), %v905_v17 }
 0x383   : > { %v1953_v20 = vpop.f32.mrb[4].mxu0  ;;  %v1961_v21 = vpop.f32.mrb[4].mxu1 }
 0x384   : > { %v2838_v22 = vadd.f32 %v1953_v20, %v785_v50  ;;  %v2840_v23 = vadd.f32 %v1961_v21, %v785_v50  ;;  %v885_v24 = vpop.f32.mrb[5].mxu0  ;;  %v917_v25 = vpop.f32.mrb[5].mxu1 }
 0x385   : > { %v2842_v26 = vadd.f32 %v885_v24, %v785_v50  ;;  %v2844_v27 = vadd.f32 %v917_v25, %v785_v50  ;;  %v1954_v28 = vpop.f32.mrb[6].mxu0  ;;  %v1962_v29 = vpop.f32.mrb[6].mxu1 }
 0x386   : > { %v2846_v30 = vadd.f32 %v1954_v28, %v785_v50  ;;  %v2848_v31 = vadd.f32 %v1962_v29, %v785_v50  ;;  %v888_v32 = vpop.f32.mrb[7].mxu0  ;;  %v920_v33 = vpop.f32.mrb[7].mxu1  ;;  %942 = vst [vmem:[#allocation10 + $0x30] sm:$0xff] (!%p1738_p7), %v2838_v22  ;;  %950 = vst [vmem:[#allocation10 + $0x70] sm:$0xff] (!%p1738_p7), %v2840_v23 }
 0x387   : > { %v2850_v34 = vadd.f32 %v888_v32, %v785_v50  ;;  %v2852_v35 = vadd.f32 %v920_v33, %v785_v50  ;;  %940 = vst [vmem:[#allocation10 + $0x20] sm:$0xff] (!%p1738_p7), %v2842_v26  ;;  %948 = vst [vmem:[#allocation10 + $0x60] sm:$0xff] (!%p1738_p7), %v2844_v27 }
 0x388   : > { %943 = vst [vmem:[#allocation10 + $0x38] sm:$0xff] %v2846_v30  ;;  %951 = vst [vmem:[#allocation10 + $0x78] sm:$0xff] %v2848_v31 }
 0x389   : > { %941 = vst [vmem:[#allocation10 + $0x28] sm:$0xff] %v2850_v34  ;;  %949 = vst [vmem:[#allocation10 + $0x68] sm:$0xff] %v2852_v35 }
 0x38a PF: > { %p1739_p10 = scmp.ge.s32.totalorder %s2445_s18, 2 }
 0x38b   : > { %v2263_v36 = vld [vmem:[%s2683_s14] sm:$0xff] (!%p1739_p10)   ;;  %v956_v37 = vmax.f32 (!%p1739_p10), %v870_v59, 0.0  ;;  %v2264_v38 = vld [vmem:[%s2683_s14 + $0x8] sm:$0xff] (!%p1739_p10)   ;;  %v957_v41 = vmax.f32 (!%p1739_p10), %v873_v56, 0.0  ;;  %v964_v42 = vmax.f32 (!%p1739_p10), %v902_v60, 0.0  ;;  %v965_v44 = vmax.f32 (!%p1739_p10), %v905_v17, 0.0 }
 0x38c   : > { %955 = sbr.rel (%p1739_p10) target bundleno = 1166 (0x48e), region = 72  ;;  %1963 = vmatprep.subr.bf16.mxu0 (!%p1739_p10), %v2263_v36  ;;  %2107 = vmatprep.subr.bf16.mxu1 (!%p1739_p10), %v2263_v36  ;;  %v2265_v45 = vld [vmem:[%s2683_s14 + $0x10] sm:$0xff] (!%p1739_p10)   ;;  %v2266_v39 = vld [vmem:[%s2683_s14 + $0x18] sm:$0xff] (!%p1739_p10)   ;;  %v2267_v47 = vld [vmem:[%s2683_s14 + $0x20] sm:$0xff] (!%p1739_p10)   ;;  %v958_v50 = vmax.f32 (!%p1739_p10), %v2830_v53, 0.0  ;;  %v959_v51 = vmax.f32 (!%p1739_p10), %v2834_v55, 0.0 }
 0x38d   : > { %1964 = vmatpush3.bf16.msra.mxu0 (!%p1739_p10), %v2263_v36  ;;  %2115 = vmatpush3.bf16.msra.mxu1 (!%p1739_p10), %v2263_v36  ;;  %v972_v43 = vpack.c.bf16 (!%p1739_p10), %v957_v41, %v956_v37  ;;  %v976_v46 = vpack.c.bf16 (!%p1739_p10), %v965_v44, %v964_v42  ;;  %v2268_v40 = vld [vmem:[%s2683_s14 + $0x28] sm:$0xff] (!%p1739_p10)   ;;  %v2269_v48 = vld [vmem:[%s2683_s14 + $0x30] sm:$0xff] (!%p1739_p10)   ;;  %v2270_v49 = vld [vmem:[%s2683_s14 + $0x38] sm:$0xff] (!%p1739_p10)   ;;  %v966_v52 = vmax.f32 (!%p1739_p10), %v2832_v54, 0.0  ;;  %v967_v57 = vmax.f32 (!%p1739_p10), %v2836_v18, 0.0 }
 0x38e   : > { %1965 = vmatprep.subr.bf16.mxu0 (!%p1739_p10), %v2264_v38  ;;  %2108 = vmatprep.subr.bf16.mxu1 (!%p1739_p10), %v2264_v38  ;;  %v960_v58 = vmax.f32 (!%p1739_p10), %v2842_v26, 0.0  ;;  %v961_v59 = vmax.f32 (!%p1739_p10), %v2850_v34, 0.0  ;;  %v968_v60 = vmax.f32 (!%p1739_p10), %v2844_v27, 0.0  ;;  %v969_v61 = vmax.f32 (!%p1739_p10), %v2852_v35, 0.0 }
 0x38f   : > { %1979 = vmatprep.mubr.bf16.mxu0 (!%p1739_p10), %v972_v43  ;;  %1987 = vmatprep.mubr.bf16.mxu1 (!%p1739_p10), %v976_v46  ;;  %v973_v62 = vpack.c.bf16 (!%p1739_p10), %v959_v51, %v958_v50  ;;  %v977_v53 = vpack.c.bf16 (!%p1739_p10), %v967_v57, %v966_v52  ;;  %v962_v18 = vmax.f32 (!%p1739_p10), %v2838_v22, 0.0  ;;  %v963_v63 = vmax.f32 (!%p1739_p10), %v2846_v30, 0.0 }
 0x390   : > { %v974_v55 = vpack.c.bf16 (!%p1739_p10), %v961_v59, %v960_v58  ;;  %v978_v54 = vpack.c.bf16 (!%p1739_p10), %v969_v61, %v968_v60  ;;  %v970_v19 = vmax.f32 (!%p1739_p10), %v2840_v23, 0.0  ;;  %v971_v56 = vmax.f32 (!%p1739_p10), %v2848_v31, 0.0 }
 0x391   : > { %1966 = vmatpush3.bf16.msra.mxu0 (!%p1739_p10), %v2264_v38  ;;  %2116 = vmatpush3.bf16.msra.mxu1 (!%p1739_p10), %v2264_v38  ;;  %v975_v17 = vpack.c.bf16 (!%p1739_p10), %v963_v63, %v962_v18 }
 0x392   : > { %1967 = vmatprep.subr.bf16.mxu0 (!%p1739_p10), %v2265_v45  ;;  %2109 = vmatprep.subr.bf16.mxu1 (!%p1739_p10), %v2265_v45  ;;  %v979_v20 = vpack.c.bf16 (!%p1739_p10), %v971_v56, %v970_v19 }
 0x395   : > { %1968 = vmatpush3.bf16.msra.mxu0 %v2265_v45  ;;  %2117 = vmatpush3.bf16.msra.mxu1 %v2265_v45 }
 0x396   : > { %1969 = vmatprep.subr.bf16.mxu0 %v2266_v39  ;;  %2110 = vmatprep.subr.bf16.mxu1 %v2266_v39 }
 0x399   : > { %1970 = vmatpush3.bf16.msra.mxu0 %v2266_v39  ;;  %2118 = vmatpush3.bf16.msra.mxu1 %v2266_v39 }
 0x39a   : > { %1971 = vmatprep.subr.bf16.mxu0 %v2267_v47  ;;  %2111 = vmatprep.subr.bf16.mxu1 %v2267_v47 }
 0x39d   : > { %1972 = vmatpush3.bf16.msra.mxu0 %v2267_v47  ;;  %2119 = vmatpush3.bf16.msra.mxu1 %v2267_v47 }
 0x39e   : > { %1973 = vmatprep.subr.bf16.mxu0 %v2268_v40  ;;  %2112 = vmatprep.subr.bf16.mxu1 %v2268_v40 }
 0x3a1   : > { %1974 = vmatpush3.bf16.msra.mxu0 %v2268_v40  ;;  %2120 = vmatpush3.bf16.msra.mxu1 %v2268_v40 }
 0x3a2   : > { %1975 = vmatprep.subr.bf16.mxu0 %v2269_v48  ;;  %2113 = vmatprep.subr.bf16.mxu1 %v2269_v48 }
 0x3a5   : > { %1976 = vmatpush3.bf16.msra.mxu0 %v2269_v48  ;;  %2121 = vmatpush3.bf16.msra.mxu1 %v2269_v48 }
 0x3a6   : > { %1977 = vmatprep.subr.bf16.mxu0 %v2270_v49  ;;  %2114 = vmatprep.subr.bf16.mxu1 %v2270_v49 }
 0x3a9   : > { %1978 = vmatpush3.bf16.msra.mxu0 %v2270_v49  ;;  %2122 = vmatpush3.bf16.msra.mxu1 %v2270_v49 }
 0x3ac   : > { %1980 = vmatmul.mubr.bf16.vlgmr.msra.gmra.mrb[0].mxu0 %v973_v62  ;;  %1988 = vmatmul.mubr.bf16.vlgmr.msra.gmra.mrb[0].mxu1 %v977_v53 }
 0x3ad   : > { %1983 = vmatprep.mubr.bf16.mxu0 %v974_v55  ;;  %1991 = vmatprep.mubr.bf16.mxu1 %v978_v54 }
 0x3b4   : > { %1984 = vmatmul.mubr.bf16.gmra.mrb[4].mxu0 %v975_v17  ;;  %1992 = vmatmul.mubr.bf16.gmra.mrb[4].mxu1 %v979_v20 }
 0x47f   : > { %v1981_v21 = vpop.f32.mrb[0].mxu0  ;;  %v1989_v24 = vpop.f32.mrb[0].mxu1 }
 0x480   : > { %v1078_v25 = vpop.f32.mrb[1].mxu0  ;;  %v1110_v26 = vpop.f32.mrb[1].mxu1 }
 0x481   : > { %v1982_v27 = vpop.f32.mrb[2].mxu0  ;;  %v1990_v28 = vpop.f32.mrb[2].mxu1 }
 0x482   : > { %v1142_v29 = vpack.c.bf16 %v1982_v27, %v1981_v21  ;;  %v1146_v22 = vpack.c.bf16 %v1990_v28, %v1989_v24  ;;  %v1081_v32 = vpop.f32.mrb[3].mxu0  ;;  %v1113_v30 = vpop.f32.mrb[3].mxu1 }
 0x483   : > { %v1141_v33 = vpack.c.bf16 %v1081_v32, %v1078_v25  ;;  %v1145_v23 = vpack.c.bf16 %v1113_v30, %v1110_v26 }
 0x484   : > { %1154 = vst [vmem:[#allocation2 + $0x8] sm:$0xff] %v1142_v29  ;;  %1158 = vst [vmem:[#allocation2 + $0x28] sm:$0xff] %v1146_v22 }
 0x485   : > { %1153 = vst [vmem:[#allocation2] sm:$0xff] %v1141_v33  ;;  %1157 = vst [vmem:[#allocation2 + $0x20] sm:$0xff] %v1145_v23 }
 0x487   : > { %v1985_v31 = vpop.f32.mrb[4].mxu0  ;;  %v1993_v34 = vpop.f32.mrb[4].mxu1 }
 0x488   : > { %v1094_v35 = vpop.f32.mrb[5].mxu0  ;;  %v1126_v36 = vpop.f32.mrb[5].mxu1 }
 0x489   : > { %v1986_v37 = vpop.f32.mrb[6].mxu0  ;;  %v1994_v38 = vpop.f32.mrb[6].mxu1 }
 0x48a   : > { %v1144_v41 = vpack.c.bf16 %v1986_v37, %v1985_v31  ;;  %v1148_v42 = vpack.c.bf16 %v1994_v38, %v1993_v34  ;;  %v1097_v43 = vpop.f32.mrb[7].mxu0  ;;  %v1129_v44 = vpop.f32.mrb[7].mxu1 }
 0x48b   : > { %v1143_v45 = vpack.c.bf16 %v1097_v43, %v1094_v35  ;;  %v1147_v46 = vpack.c.bf16 %v1129_v44, %v1126_v36 }
 0x48c   : > { %1156 = vst [vmem:[#allocation2 + $0x18] sm:$0xff] %v1144_v41  ;;  %1160 = vst [vmem:[#allocation2 + $0x38] sm:$0xff] %v1148_v42 }
 0x48d   : > { %1155 = vst [vmem:[#allocation2 + $0x10] sm:$0xff] %v1143_v45  ;;  %1159 = vst [vmem:[#allocation2 + $0x30] sm:$0xff] %v1147_v46 }
 0x48e PF: > { %p1161_p6 = scmp.eq.s32.totalorder %s3037_s29, 0 }
 0x490   : > { %p1162_p0 = pnand %p1161_p6, %p755_p1 }
 0x491   : > { %v1166_v39 = vld [vmem:[#allocation2] sm:$0xff] (!%p1162_p0)  ;;  %v1167_v47 = vld [vmem:[#allocation2 + $0x8] sm:$0xff] (!%p1162_p0)  ;;  %v1748_v40 = vcombine.low (!%p1162_p0), %v2691_v0, %v2693_v1  ;;  %v1752_v48 = vcombine.low (!%p1162_p0), %v2710_v8, %v2712_v9  ;;  %v1749_v51 = vcombine.low (!%p1162_p0), %v2695_v2, %v2697_v3  ;;  %v1753_v52 = vcombine.low (!%p1162_p0), %v2714_v10, %v2716_v11  ;;  %p1756_p12 = scmp.ne.s32.totalorder (!%p1162_p0), %s2445_s18, 2 }
 0x492   : > { %1165 = sbr.rel (%p1162_p0) target bundleno = 1688 (0x698), region = 76  ;;  %1995 = vmatprep.subr.bf16.mxu0 (!%p1162_p0), %v1166_v39  ;;  %2123 = vmatprep.subr.bf16.mxu1 (!%p1162_p0), %v1166_v39  ;;  %v1170_v0 = vld [vmem:[#allocation2 + $0x20] sm:$0xff] (!%p1162_p0)  ;;  %v1171_v1 = vld [vmem:[#allocation2 + $0x28] sm:$0xff] (!%p1162_p0)  ;;  %v1750_v57 = vcombine.low (!%p1162_p0), %v2699_v4, %v2701_v5  ;;  %v1754_v58 = vcombine.low (!%p1162_p0), %v2718_v12, %v2720_v13  ;;  %v1751_v59 = vcombine.low (!%p1162_p0), %v2706_v6, %v2708_v7  ;;  %v1175_v3 = vlaneseq (!%p1162_p0) }
 0x493   : > { %1996 = vmatpush3.bf16.msra.mxu0 (!%p1162_p0), %v1166_v39  ;;  %2131 = vmatpush3.bf16.msra.mxu1 (!%p1162_p0), %v1166_v39  ;;  %v1169_v50 = vld [vmem:[#allocation2 + $0x18] sm:$0xff] (!%p1162_p0)  ;;  %v1755_v2 = vcombine.low (!%p1162_p0), %v2722_v14, %v2724_v15 }
 0x494   : > { %1997 = vmatprep.subr.bf16.mxu0 (!%p1162_p0), %v1167_v47  ;;  %2124 = vmatprep.subr.bf16.mxu1 (!%p1162_p0), %v1167_v47  ;;  %v1168_v49 = vld [vmem:[#allocation2 + $0x10] sm:$0xff] (!%p1162_p0)  ;;  %v1173_v9 = vld [vmem:[#allocation2 + $0x38] sm:$0xff] (!%p1162_p0)  ;;  %v1176_v10 = vshrl.u32 (!%p1162_p0), %v1175_v3, 7 }
 0x495   : > { %2011 = vmatprep.mubr.bf16.mxu0 (!%p1162_p0), %v1748_v40  ;;  %2019 = vmatprep.mubr.bf16.mxu1 (!%p1162_p0), %v1752_v48  ;;  %v1172_v8 = vld [vmem:[#allocation2 + $0x30] sm:$0xff] (!%p1162_p0) }
 0x496   : > { %v1177_v11 = vsub.s32 (!%p1162_p0), 0, %v1176_v10 }
 0x497   : > { %1998 = vmatpush3.bf16.msra.mxu0 (!%p1162_p0), %v1167_v47  ;;  %2132 = vmatpush3.bf16.msra.mxu1 (!%p1162_p0), %v1167_v47 }
 0x498   : > { %1999 = vmatprep.subr.bf16.mxu0 (!%p1162_p0), %v1168_v49  ;;  %2125 = vmatprep.subr.bf16.mxu1 (!%p1162_p0), %v1168_v49  ;;  %v1178_v4 = vrot.slane (!%p1162_p0), %v2726_v16, %v1177_v11 }
 0x49b   : > { %2000 = vmatpush3.bf16.msra.mxu0 %v1168_v49  ;;  %2133 = vmatpush3.bf16.msra.mxu1 %v1168_v49 }
 0x49c   : > { %2001 = vmatprep.subr.bf16.mxu0 %v1169_v50  ;;  %2126 = vmatprep.subr.bf16.mxu1 %v1169_v50 }
 0x49f   : > { %2002 = vmatpush3.bf16.msra.mxu0 %v1169_v50  ;;  %2134 = vmatpush3.bf16.msra.mxu1 %v1169_v50 }
 0x4a0   : > { %2003 = vmatprep.subr.bf16.mxu0 %v1170_v0  ;;  %2127 = vmatprep.subr.bf16.mxu1 %v1170_v0 }
 0x4a3   : > { %2004 = vmatpush3.bf16.msra.mxu0 %v1170_v0  ;;  %2135 = vmatpush3.bf16.msra.mxu1 %v1170_v0 }
 0x4a4   : > { %2005 = vmatprep.subr.bf16.mxu0 %v1171_v1  ;;  %2128 = vmatprep.subr.bf16.mxu1 %v1171_v1 }
 0x4a7   : > { %2006 = vmatpush3.bf16.msra.mxu0 %v1171_v1  ;;  %2136 = vmatpush3.bf16.msra.mxu1 %v1171_v1 }
 0x4a8   : > { %2007 = vmatprep.subr.bf16.mxu0 %v1172_v8  ;;  %2129 = vmatprep.subr.bf16.mxu1 %v1172_v8 }
 0x4ab   : > { %2008 = vmatpush3.bf16.msra.mxu0 %v1172_v8  ;;  %2137 = vmatpush3.bf16.msra.mxu1 %v1172_v8 }
 0x4ac   : > { %2009 = vmatprep.subr.bf16.mxu0 %v1173_v9  ;;  %2130 = vmatprep.subr.bf16.mxu1 %v1173_v9 }
 0x4af   : > { %2010 = vmatpush3.bf16.msra.mxu0 %v1173_v9  ;;  %2138 = vmatpush3.bf16.msra.mxu1 %v1173_v9 }
 0x4b2   : > { %2012 = vmatmul.mubr.bf16.vlgmr.msra.gmra.mrb[0].mxu0 %v1749_v51  ;;  %2020 = vmatmul.mubr.bf16.vlgmr.msra.gmra.mrb[0].mxu1 %v1753_v52 }
 0x4b3   : > { %2015 = vmatprep.mubr.bf16.mxu0 %v1750_v57  ;;  %2023 = vmatprep.mubr.bf16.mxu1 %v1754_v58 }
 0x4ba   : > { %2016 = vmatmul.mubr.bf16.gmra.mrb[4].mxu0 %v1751_v59  ;;  %2024 = vmatmul.mubr.bf16.gmra.mrb[4].mxu1 %v1755_v2 }
 0x585   : > { %v2013_v5 = vpop.f32.mrb[0].mxu0  ;;  %v2021_v60 = vpop.f32.mrb[0].mxu1 }
 0x586   : > { %v2908_v12 = vadd.f32 %v2013_v5, %v1178_v4  ;;  %v2910_v13 = vadd.f32 %v2021_v60, %v1178_v4  ;;  %v1262_v61 = vpop.f32.mrb[1].mxu0  ;;  %v1294_v62 = vpop.f32.mrb[1].mxu1 }
 0x587   : > { %v1263_v53 = vadd.f32 %v1262_v61, %v1178_v4  ;;  %v1295_v6 = vadd.f32 %v1294_v62, %v1178_v4  ;;  %v2014_v7 = vpop.f32.mrb[2].mxu0  ;;  %v2022_v55 = vpop.f32.mrb[2].mxu1 }
 0x588   : > { %v2912_v14 = vadd.f32 %v2014_v7, %v1178_v4  ;;  %v2914_v15 = vadd.f32 %v2022_v55, %v1178_v4  ;;  %v1265_v54 = vpop.f32.mrb[3].mxu0  ;;  %v1297_v18 = vpop.f32.mrb[3].mxu1  ;;  %1331 = vst [vmem:[#allocation10 + $0x10] sm:$0xff] (!%p1756_p12), %v2908_v12  ;;  %1339 = vst [vmem:[#allocation10 + $0x50] sm:$0xff] (!%p1756_p12), %v2910_v13 }
 0x589   : > { %v1266_v63 = vadd.f32 %v1265_v54, %v1178_v4  ;;  %v1298_v16 = vadd.f32 %v1297_v18, %v1178_v4  ;;  %1329 = vst [vmem:[#allocation10] sm:$0xff] (!%p1756_p12), %v1263_v53  ;;  %1337 = vst [vmem:[#allocation10 + $0x40] sm:$0xff] (!%p1756_p12), %v1295_v6 }
 0x58a   : > { %1332 = vst [vmem:[#allocation10 + $0x18] sm:$0xff] (!%p1756_p12), %v2912_v14  ;;  %1340 = vst [vmem:[#allocation10 + $0x58] sm:$0xff] (!%p1756_p12), %v2914_v15 }
 0x58b   : > { %1328 = sbr.rel (%p1756_p12) target bundleno = 1428 (0x594), region = 80  ;;  %1330 = vst [vmem:[#allocation10 + $0x8] sm:$0xff] (!%p1756_p12), %v1266_v63  ;;  %1338 = vst [vmem:[#allocation10 + $0x48] sm:$0xff] (!%p1756_p12), %v1298_v16 }
 0x58d   : > { %v2017_v19 = vpop.f32.mrb[4].mxu0  ;;  %v2025_v56 = vpop.f32.mrb[4].mxu1 }
 0x58e   : > { %v2916_v17 = vadd.f32 %v2017_v19, %v1178_v4  ;;  %v2918_v20 = vadd.f32 %v2025_v56, %v1178_v4  ;;  %v1278_v21 = vpop.f32.mrb[5].mxu0  ;;  %v1310_v24 = vpop.f32.mrb[5].mxu1 }
 0x58f   : > { %v2920_v25 = vadd.f32 %v1278_v21, %v1178_v4  ;;  %v2922_v26 = vadd.f32 %v1310_v24, %v1178_v4  ;;  %v2018_v27 = vpop.f32.mrb[6].mxu0  ;;  %v2026_v28 = vpop.f32.mrb[6].mxu1 }
 0x590   : > { %v2924_v29 = vadd.f32 %v2018_v27, %v1178_v4  ;;  %v2926_v22 = vadd.f32 %v2026_v28, %v1178_v4  ;;  %v1281_v32 = vpop.f32.mrb[7].mxu0  ;;  %v1313_v30 = vpop.f32.mrb[7].mxu1  ;;  %1335 = vst [vmem:[#allocation10 + $0x30] sm:$0xff] (!%p1756_p12), %v2916_v17  ;;  %1343 = vst [vmem:[#allocation10 + $0x70] sm:$0xff] (!%p1756_p12), %v2918_v20 }
 0x591   : > { %v2928_v33 = vadd.f32 %v1281_v32, %v1178_v4  ;;  %v2930_v23 = vadd.f32 %v1313_v30, %v1178_v4  ;;  %1333 = vst [vmem:[#allocation10 + $0x20] sm:$0xff] (!%p1756_p12), %v2920_v25  ;;  %1341 = vst [vmem:[#allocation10 + $0x60] sm:$0xff] (!%p1756_p12), %v2922_v26 }
 0x592   : > { %1336 = vst [vmem:[#allocation10 + $0x38] sm:$0xff] %v2924_v29  ;;  %1344 = vst [vmem:[#allocation10 + $0x78] sm:$0xff] %v2926_v22 }
 0x593   : > { %1334 = vst [vmem:[#allocation10 + $0x28] sm:$0xff] %v2928_v33  ;;  %1342 = vst [vmem:[#allocation10 + $0x68] sm:$0xff] %v2930_v23 }
 0x594 PF: > { %p1757_p11 = scmp.ge.s32.totalorder %s2445_s18, 2 }
 0x595   : > { %v2271_v31 = vld [vmem:[%s2683_s14] sm:$0xff] (!%p1757_p11)   ;;  %v1349_v34 = vmax.f32 (!%p1757_p11), %v1263_v53, 0.0  ;;  %v2272_v35 = vld [vmem:[%s2683_s14 + $0x8] sm:$0xff] (!%p1757_p11)   ;;  %v1350_v36 = vmax.f32 (!%p1757_p11), %v1266_v63, 0.0  ;;  %v1357_v37 = vmax.f32 (!%p1757_p11), %v1295_v6, 0.0  ;;  %v1358_v41 = vmax.f32 (!%p1757_p11), %v1298_v16, 0.0 }
 0x596   : > { %1348 = sbr.rel (%p1757_p11) target bundleno = 1688 (0x698), region = 84  ;;  %2027 = vmatprep.subr.bf16.mxu0 (!%p1757_p11), %v2271_v31  ;;  %2139 = vmatprep.subr.bf16.mxu1 (!%p1757_p11), %v2271_v31  ;;  %v2273_v42 = vld [vmem:[%s2683_s14 + $0x10] sm:$0xff] (!%p1757_p11)   ;;  %v2274_v44 = vld [vmem:[%s2683_s14 + $0x18] sm:$0xff] (!%p1757_p11)   ;;  %v2275_v45 = vld [vmem:[%s2683_s14 + $0x20] sm:$0xff] (!%p1757_p11)   ;;  %v1351_v40 = vmax.f32 (!%p1757_p11), %v2908_v12, 0.0  ;;  %v1352_v48 = vmax.f32 (!%p1757_p11), %v2912_v14, 0.0 }
 0x597   : > { %2028 = vmatpush3.bf16.msra.mxu0 (!%p1757_p11), %v2271_v31  ;;  %2147 = vmatpush3.bf16.msra.mxu1 (!%p1757_p11), %v2271_v31  ;;  %v1365_v38 = vpack.c.bf16 (!%p1757_p11), %v1350_v36, %v1349_v34  ;;  %v1369_v43 = vpack.c.bf16 (!%p1757_p11), %v1358_v41, %v1357_v37  ;;  %v2276_v46 = vld [vmem:[%s2683_s14 + $0x28] sm:$0xff] (!%p1757_p11)   ;;  %v2277_v39 = vld [vmem:[%s2683_s14 + $0x30] sm:$0xff] (!%p1757_p11)   ;;  %v2278_v47 = vld [vmem:[%s2683_s14 + $0x38] sm:$0xff] (!%p1757_p11)   ;;  %v1359_v49 = vmax.f32 (!%p1757_p11), %v2910_v13, 0.0  ;;  %v1360_v50 = vmax.f32 (!%p1757_p11), %v2914_v15, 0.0 }
 0x598   : > { %2029 = vmatprep.subr.bf16.mxu0 (!%p1757_p11), %v2272_v35  ;;  %2140 = vmatprep.subr.bf16.mxu1 (!%p1757_p11), %v2272_v35  ;;  %v1353_v0 = vmax.f32 (!%p1757_p11), %v2920_v25, 0.0  ;;  %v1354_v1 = vmax.f32 (!%p1757_p11), %v2928_v33, 0.0  ;;  %v1361_v8 = vmax.f32 (!%p1757_p11), %v2922_v26, 0.0  ;;  %v1362_v9 = vmax.f32 (!%p1757_p11), %v2930_v23, 0.0 }
 0x599   : > { %2043 = vmatprep.mubr.bf16.mxu0 (!%p1757_p11), %v1365_v38  ;;  %2051 = vmatprep.mubr.bf16.mxu1 (!%p1757_p11), %v1369_v43  ;;  %v1366_v51 = vpack.c.bf16 (!%p1757_p11), %v1352_v48, %v1351_v40  ;;  %v1370_v52 = vpack.c.bf16 (!%p1757_p11), %v1360_v50, %v1359_v49  ;;  %v1355_v59 = vmax.f32 (!%p1757_p11), %v2916_v17, 0.0  ;;  %v1356_v2 = vmax.f32 (!%p1757_p11), %v2924_v29, 0.0 }
 0x59a   : > { %v1367_v57 = vpack.c.bf16 (!%p1757_p11), %v1354_v1, %v1353_v0  ;;  %v1371_v58 = vpack.c.bf16 (!%p1757_p11), %v1362_v9, %v1361_v8  ;;  %v1363_v3 = vmax.f32 (!%p1757_p11), %v2918_v20, 0.0  ;;  %v1364_v10 = vmax.f32 (!%p1757_p11), %v2926_v22, 0.0 }
 0x59b   : > { %2030 = vmatpush3.bf16.msra.mxu0 (!%p1757_p11), %v2272_v35  ;;  %2148 = vmatpush3.bf16.msra.mxu1 (!%p1757_p11), %v2272_v35  ;;  %v1368_v11 = vpack.c.bf16 (!%p1757_p11), %v1356_v2, %v1355_v59 }
 0x59c   : > { %2031 = vmatprep.subr.bf16.mxu0 (!%p1757_p11), %v2273_v42  ;;  %2141 = vmatprep.subr.bf16.mxu1 (!%p1757_p11), %v2273_v42  ;;  %v1372_v4 = vpack.c.bf16 (!%p1757_p11), %v1364_v10, %v1363_v3 }
 0x59f   : > { %2032 = vmatpush3.bf16.msra.mxu0 %v2273_v42  ;;  %2149 = vmatpush3.bf16.msra.mxu1 %v2273_v42 }
 0x5a0   : > { %2033 = vmatprep.subr.bf16.mxu0 %v2274_v44  ;;  %2142 = vmatprep.subr.bf16.mxu1 %v2274_v44 }
 0x5a3   : > { %2034 = vmatpush3.bf16.msra.mxu0 %v2274_v44  ;;  %2150 = vmatpush3.bf16.msra.mxu1 %v2274_v44 }
 0x5a4   : > { %2035 = vmatprep.subr.bf16.mxu0 %v2275_v45  ;;  %2143 = vmatprep.subr.bf16.mxu1 %v2275_v45 }
 0x5a7   : > { %2036 = vmatpush3.bf16.msra.mxu0 %v2275_v45  ;;  %2151 = vmatpush3.bf16.msra.mxu1 %v2275_v45 }
 0x5a8   : > { %2037 = vmatprep.subr.bf16.mxu0 %v2276_v46  ;;  %2144 = vmatprep.subr.bf16.mxu1 %v2276_v46 }
 0x5ab   : > { %2038 = vmatpush3.bf16.msra.mxu0 %v2276_v46  ;;  %2152 = vmatpush3.bf16.msra.mxu1 %v2276_v46 }
 0x5ac   : > { %2039 = vmatprep.subr.bf16.mxu0 %v2277_v39  ;;  %2145 = vmatprep.subr.bf16.mxu1 %v2277_v39 }
 0x5af   : > { %2040 = vmatpush3.bf16.msra.mxu0 %v2277_v39  ;;  %2153 = vmatpush3.bf16.msra.mxu1 %v2277_v39 }
 0x5b0   : > { %2041 = vmatprep.subr.bf16.mxu0 %v2278_v47  ;;  %2146 = vmatprep.subr.bf16.mxu1 %v2278_v47 }
 0x5b3   : > { %2042 = vmatpush3.bf16.msra.mxu0 %v2278_v47  ;;  %2154 = vmatpush3.bf16.msra.mxu1 %v2278_v47 }
 0x5b6   : > { %2044 = vmatmul.mubr.bf16.vlgmr.msra.gmra.mrb[0].mxu0 %v1366_v51  ;;  %2052 = vmatmul.mubr.bf16.vlgmr.msra.gmra.mrb[0].mxu1 %v1370_v52 }
 0x5b7   : > { %2047 = vmatprep.mubr.bf16.mxu0 %v1367_v57  ;;  %2055 = vmatprep.mubr.bf16.mxu1 %v1371_v58 }
 0x5be   : > { %2048 = vmatmul.mubr.bf16.gmra.mrb[4].mxu0 %v1368_v11  ;;  %2056 = vmatmul.mubr.bf16.gmra.mrb[4].mxu1 %v1372_v4 }
 0x689   : > { %v2045_v5 = vpop.f32.mrb[0].mxu0  ;;  %v2053_v60 = vpop.f32.mrb[0].mxu1 }
 0x68a   : > { %v1471_v12 = vpop.f32.mrb[1].mxu0  ;;  %v1503_v13 = vpop.f32.mrb[1].mxu1 }
 0x68b   : > { %v2046_v61 = vpop.f32.mrb[2].mxu0  ;;  %v2054_v62 = vpop.f32.mrb[2].mxu1 }
 0x68c   : > { %v1535_v53 = vpack.c.bf16 %v2046_v61, %v2045_v5  ;;  %v1539_v6 = vpack.c.bf16 %v2054_v62, %v2053_v60  ;;  %v1474_v7 = vpop.f32.mrb[3].mxu0  ;;  %v1506_v55 = vpop.f32.mrb[3].mxu1 }
 0x68d   : > { %v1534_v14 = vpack.c.bf16 %v1474_v7, %v1471_v12  ;;  %v1538_v15 = vpack.c.bf16 %v1506_v55, %v1503_v13 }
 0x68e   : > { %1547 = vst [vmem:[#allocation3 + $0x8] sm:$0xff] %v1535_v53  ;;  %1551 = vst [vmem:[#allocation3 + $0x28] sm:$0xff] %v1539_v6 }
 0x68f   : > { %1546 = vst [vmem:[#allocation3] sm:$0xff] %v1534_v14  ;;  %1550 = vst [vmem:[#allocation3 + $0x20] sm:$0xff] %v1538_v15 }
 0x691   : > { %v2049_v54 = vpop.f32.mrb[4].mxu0  ;;  %v2057_v18 = vpop.f32.mrb[4].mxu1 }
 0x692   : > { %v1487_v63 = vpop.f32.mrb[5].mxu0  ;;  %v1519_v16 = vpop.f32.mrb[5].mxu1 }
 0x693   : > { %v2050_v19 = vpop.f32.mrb[6].mxu0  ;;  %v2058_v56 = vpop.f32.mrb[6].mxu1 }
 0x694   : > { %v1537_v17 = vpack.c.bf16 %v2050_v19, %v2049_v54  ;;  %v1541_v20 = vpack.c.bf16 %v2058_v56, %v2057_v18  ;;  %v1490_v21 = vpop.f32.mrb[7].mxu0  ;;  %v1522_v24 = vpop.f32.mrb[7].mxu1 }
 0x695   : > { %v1536_v25 = vpack.c.bf16 %v1490_v21, %v1487_v63  ;;  %v1540_v26 = vpack.c.bf16 %v1522_v24, %v1519_v16 }
 0x696   : > { %1549 = vst [vmem:[#allocation3 + $0x18] sm:$0xff] %v1537_v17  ;;  %1553 = vst [vmem:[#allocation3 + $0x38] sm:$0xff] %v1541_v20 }
 0x697   : > { %1548 = vst [vmem:[#allocation3 + $0x10] sm:$0xff] %v1536_v25  ;;  %1552 = vst [vmem:[#allocation3 + $0x30] sm:$0xff] %v1540_v26 }
 0x698 PF: > { %p2189_p2 = scmp.eq.s32.totalorder %s2517_s21, 2  ;;  %s2460_s18 = smov [#allocation10]  }
 0x699   : > { %s1570_s10 = sshll.u32 %s2460_s18, 4  ;;  %s1571_s10 = int_to_ptr.vmem [resolvable:$true] %s1570_s10 }
 0x69a   : > { %s2365_s26 = scalar_lea.vmem %s1571_s10, 2048  ;;  %s2371_s12 = scalar_lea.vmem %s1571_s10, 4096 }
 0x69b   : > { %p2366_p4 = scmp.ne.s32.totalorder %s1571_s10, %s2365_s26  ;;  %p2372_p13 = scmp.lt.s32.totalorder %s1571_s10, %s1571_s10 }
 0x69c   : > { %p2373_p1 = scmp.lt.s32.totalorder %s2371_s12, %s2365_s26 }
 0x69d   : > { %p2367_p5 = pnand %p2366_p4, %p2189_p2 }
 0x69e   : > { %p2374_p3 = por %p2373_p1, %p2372_p13 }
 0x69f   : > { %p2368_p9 = pneg %p2367_p5 }
 0x6a1   : > { %p2375_p8 = pnand %p2374_p3, %p2368_p9 }
 0x6a3   : > { %2378 = shalt.err (!%p2375_p8)
}
 0x6a4   : > { %s2379_s28 = scalar_lea.hbm %s3010_s4, 2048 }
 0x6a5   : > { %p2380_p7 = scmp.ne.s32.totalorder %s3010_s4, %s2379_s28  ;;  %p2385_p0 = scmp.lt.u32.totalorder %s2379_s28, %s3010_s4 }
 0x6a7   : > { %p2381_p10 = pnand %p2380_p7, %p2189_p2 }
 0x6a9   : > { %p2382_p6 = pneg %p2381_p10 }
 0x6ab   : > { %p2387_p12 = pnand %p2385_p0, %p2382_p6 }
 0x6ad   : > { %2390 = shalt.err (!%p2387_p12)
}
 0x6ae   : > { %s2461_s11 = smov 128   ;;  %s2462_s5 = smov 8  }
 0x6af   : > { %2166 = dma.vmem_to_hbm [thread:$0]  (%p2189_p2), %s1571_s10, 2048, %s3010_s4, [#allocation6], %s2461_s11, %s2461_s11, %s2462_s5  }
 0x6b0 PF: > { %p2190_p11 = scmp.ge.s32.totalorder %s2453_s20, 2  ;;  %s3026_s27 = sadd.s32 4294967294, %s2453_s20  }
 0x6b1   : > { %p2191_p4 = scmp.eq.s32.totalorder %s3026_s27, 2 }
 0x6b3   : > { %p2181_p5 = pnand %p2191_p4, %p2190_p11 }
 0x6b5   : > { %2428 = dma.done.wait (!%p2181_p5), [#allocation6], 2048  }
 0x6b6   : > { %2430 = vsyncadd (!%p2181_p5), [#allocation6], 4294965248  ;;  %s19_s20 = sadd.s32 1, %s2453_s20   ;;  %s3027_s15 = smov %s2437_s16 }
 0x6b7   : > { %p16_p9 = scmp.ge.s32.totalorder %s19_s20, 5   ;;  %s3028_s16 = smov %s2441_s17 }
 0x6b8   : > { %s3029_s17 = smov %s2669_s7  ;;  %s3030_s18 = smov %s2449_s19 }
 0x6b9   : > { %s3031_s19 = smov %s3033_s25  ;;  %18 = sbr.rel (!%p16_p9) target bundleno = 6 (0x6), region = 131 }
 0x6c0   :  { %1591 = vsyncpa [#allocation5], 1 }
 0x6c1   :  { %1593 = vsyncpa [#allocation5 + $0x1], 1 }
 0x6c2   :  { %1594 = vsyncpa [#allocation8], 1 }
 0x6c3   :  { %1595 = vsyncpa [#allocation6], 1 }
 0x6c4   :  { %1597 = vsyncpa [#allocation6 + $0x1], 1 }

</bundles_post_ra>
